<compile_context>
chip_gen: v5e
topology: v5e:2x2
jax: 0.10.0
libtpu: 0.0.40
codegen_flags: <defaults>
</compile_context>

<pallas_src>
import functools

import jax
import jax.numpy as jnp
from jax.experimental import pallas as pl
from jax.experimental.pallas import tpu as pltpu


_VPU_C_MAX = 16  # <= this many channels: skip the MXU entirely (it would be <6% utilized)


def _residual_conv_vpu_kernel(x_ref, colmod_ref, w_ref, b_ref, o_ref, *, H, W):
    # x_ref / o_ref : (NB, C, HWp) VMEM, lanes = flattened spatial padded to 128.
    # colmod_ref    : (1, HWp) int32 VMEM, colmod[p] = p % W (precomputed on host).
    # w_ref         : (9*C*C,) f32 SMEM, index t*C*C + co*C + ci, t = (dh+1)*3 + (dw+1).
    # b_ref         : (C,) f32 SMEM.
    NB, C, HWp = x_ref.shape
    HW = H * W

    x = x_ref[...]                              # native dtype; taps are never upcast
    xc = [x[:, ci, :] for ci in range(C)]       # per input channel, (NB, HWp)

    colmod = colmod_ref[...]                                      # (1, HWp)
    col = jax.lax.broadcasted_iota(jnp.int32, (1, HWp), 1)        # flat spatial index
    left_ok = colmod >= 1            # w-1 in range
    right_ok = colmod <= (W - 2)     # w+1 in range
    up_ok = col >= W                 # h-1 in range
    down_ok = col < (HW - W)         # h+1 in range

    # f32 accumulators initialised with the residual and the conv bias:
    # out = x + (conv_nobias(x) + bias)
    accs = [xc[co].astype(jnp.float32) + b_ref[co] for co in range(C)]

    t = 0
    for dh in (-1, 0, 1):
        for dw in (-1, 0, 1):
            d = dh * W + dw
            mask = None
            if dw == -1:
                mask = left_ok
            elif dw == 1:
                mask = right_ok
            if dh == -1:
                mask = up_ok if mask is None else (mask & up_ok)
            elif dh == 1:
                mask = down_ok if mask is None else (mask & down_ok)
            for ci in range(C):
                # tap value x[ci, p + d]: XLU lane rotation, then boundary mask.
                v = xc[ci] if d == 0 else pltpu.roll(xc[ci], shift=(-d) % HWp, axis=1)
                if mask is not None:
                    v = jnp.where(mask, v, jnp.zeros_like(v))
                for co in range(C):
                    accs[co] = accs[co] + v * w_ref[t * C * C + co * C + ci]
            t += 1

    o_ref[...] = jnp.stack(accs, axis=1).astype(o_ref.dtype)      # one lane-dense store


def _residual_conv_mxu_kernel(x_ref, colmod_ref, w_ref, b_ref, o_ref, *, H, W):
    # Larger-C path: per-tap (C, C) @ (C, HWp) MXU matmuls, accumulated in f32.
    NB, C, HWp = x_ref.shape
    HW = H * W

    x = x_ref[...]                                                # native dtype
    colmod = colmod_ref[...]
    col = jax.lax.broadcasted_iota(jnp.int32, (1, HWp), 1)
    left_ok, right_ok = colmod >= 1, colmod <= (W - 2)
    up_ok, down_ok = col >= W, col < (HW - W)

    acc = x.astype(jnp.float32) + b_ref[...].astype(jnp.float32)  # residual + bias

    t = 0
    for dh in (-1, 0, 1):
        for dw in (-1, 0, 1):
            d = dh * W + dw
            mask = None
            if dw == -1:
                mask = left_ok
            elif dw == 1:
                mask = right_ok
            if dh == -1:
                mask = up_ok if mask is None else (mask & up_ok)
            elif dh == 1:
                mask = down_ok if mask is None else (mask & down_ok)
            v = x if d == 0 else pltpu.roll(x, shift=(-d) % HWp, axis=2)
            if mask is not None:
                v = jnp.where(mask[:, None, :], v, jnp.zeros_like(v))
            acc = acc + jnp.einsum('oc,ncp->nop', w_ref[t], v,
                                   preferred_element_type=jnp.float32)
            t += 1

    o_ref[...] = acc.astype(o_ref.dtype)


def _vmem_limit_bytes():
    """Generation-aware scoped-VMEM budget (v7x: 64 MiB physical, v5e/v6e: 128 MiB)."""
    cap = 64 << 20  # conservative default if the query is unavailable
    try:
        cap = int(getattr(pltpu.get_tpu_info(), "vmem_capacity_bytes", cap))
    except Exception:
        pass
    # ~3/4 of physical, capped: 48 MiB on v7x, 96 MiB on v5e/v6e.
    return min((cap * 3) // 4, 96 << 20)


def _pick_batch_tile(N, C, HWp, itemsize, vmem_limit):
    """Largest images-per-step that fits the VMEM budget, with >= 2 grid steps."""
    # Per-image cost: double-buffered input block + double-buffered output block
    # + ~3 block-equivalents of f32 working set (accumulators, current tap, casts).
    per_img = 4 * C * HWp * itemsize + 3 * C * HWp * 4
    nb = max(1, min(N, vmem_limit // max(per_img, 1)))
    if N >= 2:
        # v7x has 2 TensorCores: never swallow the whole batch into one grid step.
        nb = min(nb, (N + 1) // 2)
    return int(nb)


def prepare_residual_params(weight_oihw, bias, H, W, x_dtype=jnp.float32):
    """One-time (parameter-update time) conversion to kernel layout."""
    C = weight_oihw.shape[0]
    HW = H * W
    HWp = ((HW + 127) // 128) * 128
    # Tap-major weight: w_t[t, co, ci] with t = (dh+1)*3 + (dw+1) (= kh*3 + kw).
    w_t = jnp.transpose(weight_oihw, (2, 3, 0, 1)).reshape(9, C, C)
    if C <= _VPU_C_MAX:
        w = w_t.reshape(-1).astype(jnp.float32)              # SMEM scalar table
        b = bias.astype(jnp.float32)                         # SMEM scalars
    else:
        w_dtype = jnp.bfloat16 if x_dtype == jnp.bfloat16 else jnp.float32
        w = w_t.astype(w_dtype)                               # tiny resident VMEM weight
        b = bias.astype(jnp.float32).reshape(1, C, 1)
    colmod = (jnp.arange(HWp, dtype=jnp.int32) % W).reshape(1, HWp)
    return {"w": w, "b": b, "colmod": colmod}


def residual_forward(x_nchw, params):
    """x + Conv2d_3x3_same(x); native NCHW in / out."""
    N, C, H, W = x_nchw.shape
    HW = H * W
    HWp = ((HW + 127) // 128) * 128

    # Free contiguous reshape; pad the flattened spatial axis to a lane multiple so
    # every store is an unmasked full-width vst (e.g. 14x14 / 7x7 spatial sizes).
    x3 = x_nchw.reshape(N, C, HW)
    if HWp != HW:
        x3 = jnp.pad(x3, ((0, 0), (0, 0), (0, HWp - HW)))

    vmem_limit = _vmem_limit_bytes()
    NB = _pick_batch_tile(N, C, HWp, x3.dtype.itemsize, vmem_limit)
    G = pl.cdiv(N, NB)
    use_vpu = C <= _VPU_C_MAX

    x_spec = pl.BlockSpec((NB, C, HWp), lambda g: (g, 0, 0))
    col_spec = pl.BlockSpec((1, HWp), lambda g: (0, 0))
    if use_vpu:
        kernel = functools.partial(_residual_conv_vpu_kernel, H=H, W=W)
        w_spec = pl.BlockSpec(memory_space=pltpu.MemorySpace.SMEM)
        b_spec = pl.BlockSpec(memory_space=pltpu.MemorySpace.SMEM)
    else:
        kernel = functools.partial(_residual_conv_mxu_kernel, H=H, W=W)
        # Weight is only 9*C*C elements now, so default double-buffering is cheap.
        w_spec = pl.BlockSpec((9, C, C), lambda g: (0, 0, 0))
        b_spec = pl.BlockSpec((1, C, 1), lambda g: (0, 0, 0))

    out3 = pl.pallas_call(
        kernel,
        out_shape=jax.ShapeDtypeStruct((N, C, HWp), x_nchw.dtype),
        grid_spec=pltpu.PrefetchScalarGridSpec(
            num_scalar_prefetch=0,
            grid=(G,),
            in_specs=[x_spec, col_spec, w_spec, b_spec],
            out_specs=pl.BlockSpec((NB, C, HWp), lambda g: (g, 0, 0)),
        ),
        compiler_params=pltpu.CompilerParams(
            dimension_semantics=("parallel",),
            vmem_limit_bytes=vmem_limit,
        ),
    )(x3, params["colmod"], params["w"], params["b"])

    if HWp != HW:
        out3 = out3[..., :HW]
    return out3.reshape(N, C, H, W)


if __name__ == "__main__":
    key = jax.random.PRNGKey(0)
    k_x, k_w, k_b = jax.random.split(key, 3)

    N, C, H, W = 2, 4, 16, 16
    x = jax.random.normal(k_x, (N, C, H, W), dtype=jnp.float32)
    # Conv2d(C, C, 3, padding=1) parameters (OIHW weight, per-channel bias)
    weight = 0.1 * jax.random.normal(k_w, (C, C, 3, 3), dtype=jnp.float32)
    bias = 0.1 * jax.random.normal(k_b, (C,), dtype=jnp.float32)

    params = prepare_residual_params(weight, bias, H, W, x.dtype)
    out = residual_forward(x, params)
    out = jax.block_until_ready(out)

    # Reference: x + conv(x) in plain JAX.
    ref = x + (
        jax.lax.conv_general_dilated(
            x, weight, window_strides=(1, 1), padding="SAME",
            dimension_numbers=("NCHW", "OIHW", "NCHW"),
        )
        + bias.reshape(1, C, 1, 1)
    )
    assert out.shape == (N, C, H, W)
    err = float(jnp.max(jnp.abs(out - ref)))
    assert jnp.allclose(out, ref, atol=1e-3, rtol=1e-3), err

    print("KERNEL_OK")
</pallas_src>

<mosaic_0001>
module attributes {stable_mosaic.version = 11 : i64} {
  func.func @_residual_conv_vpu_kernel(%arg0: i32, %arg1: memref<1x4x256xf32, #tpu.memory_space<vmem>>, %arg2: memref<1x256xi32, #tpu.memory_space<vmem>>, %arg3: memref<144xf32, #tpu.memory_space<smem>>, %arg4: memref<4xf32, #tpu.memory_space<smem>>, %arg5: memref<1x4x256xf32, #tpu.memory_space<vmem>>) attributes {dimension_semantics = [#tpu.dimension_semantics<parallel>], iteration_bounds = array<i64: 2>, scalar_prefetch = 0 : i64, scratch_operands = 0 : i64, tpu.core_type = #tpu.core_type<tc>, window_params = [{transform_indices = @transform_0, window_bounds = array<i64: 1, 4, 256>}, {pipeline_mode = #tpu.pipeline_mode<synchronous>, transform_indices = @transform_1, window_bounds = array<i64: 1, 256>}, {transform_indices = @transform_2, window_bounds = array<i64: 144>}, {transform_indices = @transform_3, window_bounds = array<i64: 4>}, {transform_indices = @transform_4, window_bounds = array<i64: 1, 4, 256>}]} {
    %c0 = arith.constant 0 : index
    %c0_0 = arith.constant 0 : index
    %c0_1 = arith.constant 0 : index
    %0 = vector.load %arg1[%c0, %c0_0, %c0_1] : memref<1x4x256xf32, #tpu.memory_space<vmem>>, vector<1x4x256xf32>
    %1 = vector.extract_strided_slice %0 {offsets = [0, 0, 0], sizes = [1, 1, 256], strides = [1, 1, 1]} : vector<1x4x256xf32> to vector<1x1x256xf32>
    %2 = vector.shape_cast %1 : vector<1x1x256xf32> to vector<1x256xf32>
    %3 = vector.extract_strided_slice %0 {offsets = [0, 1, 0], sizes = [1, 1, 256], strides = [1, 1, 1]} : vector<1x4x256xf32> to vector<1x1x256xf32>
    %4 = vector.shape_cast %3 : vector<1x1x256xf32> to vector<1x256xf32>
    %5 = vector.extract_strided_slice %0 {offsets = [0, 2, 0], sizes = [1, 1, 256], strides = [1, 1, 1]} : vector<1x4x256xf32> to vector<1x1x256xf32>
    %6 = vector.shape_cast %5 : vector<1x1x256xf32> to vector<1x256xf32>
    %7 = vector.extract_strided_slice %0 {offsets = [0, 3, 0], sizes = [1, 1, 256], strides = [1, 1, 1]} : vector<1x4x256xf32> to vector<1x1x256xf32>
    %8 = vector.shape_cast %7 : vector<1x1x256xf32> to vector<1x256xf32>
    %c0_2 = arith.constant 0 : index
    %c0_3 = arith.constant 0 : index
    %9 = vector.load %arg2[%c0_2, %c0_3] : memref<1x256xi32, #tpu.memory_space<vmem>>, vector<1x256xi32>
    %10 = tpu.iota {dimensions = array<i32: 1>} : vector<1x256xi32>
    %c1_i32 = arith.constant 1 : i32
    %11 = vector.broadcast %c1_i32 : i32 to vector<1x256xi32>
    %12 = arith.cmpi sge, %9, %11 : vector<1x256xi32>
    %c14_i32 = arith.constant 14 : i32
    %13 = vector.broadcast %c14_i32 : i32 to vector<1x256xi32>
    %14 = arith.cmpi sle, %9, %13 : vector<1x256xi32>
    %c16_i32 = arith.constant 16 : i32
    %15 = vector.broadcast %c16_i32 : i32 to vector<1x256xi32>
    %16 = arith.cmpi sge, %10, %15 : vector<1x256xi32>
    %c240_i32 = arith.constant 240 : i32
    %17 = vector.broadcast %c240_i32 : i32 to vector<1x256xi32>
    %18 = arith.cmpi slt, %10, %17 : vector<1x256xi32>
    %c0_4 = arith.constant 0 : index
    %19 = memref.load %arg4[%c0_4] : memref<4xf32, #tpu.memory_space<smem>>
    %20 = vector.broadcast %19 : f32 to vector<1x256xf32>
    %21 = arith.addf %2, %20 : vector<1x256xf32>
    %c1 = arith.constant 1 : index
    %22 = memref.load %arg4[%c1] : memref<4xf32, #tpu.memory_space<smem>>
    %23 = vector.broadcast %22 : f32 to vector<1x256xf32>
    %24 = arith.addf %4, %23 : vector<1x256xf32>
    %c2 = arith.constant 2 : index
    %25 = memref.load %arg4[%c2] : memref<4xf32, #tpu.memory_space<smem>>
    %26 = vector.broadcast %25 : f32 to vector<1x256xf32>
    %27 = arith.addf %6, %26 : vector<1x256xf32>
    %c3 = arith.constant 3 : index
    %28 = memref.load %arg4[%c3] : memref<4xf32, #tpu.memory_space<smem>>
    %29 = vector.broadcast %28 : f32 to vector<1x256xf32>
    %30 = arith.addf %8, %29 : vector<1x256xf32>
    %31 = arith.andi %12, %16 : vector<1x256xi1>
    %c17_i32 = arith.constant 17 : i32
    %32 = tpu.dynamic_rotate %2 by %c17_i32 dim 1 : vector<1x256xf32>, i32 -> vector<1x256xf32>
    %cst = arith.constant 0.000000e+00 : f32
    %33 = vector.broadcast %cst : f32 to vector<1x256xf32>
    %34 = arith.select %31, %32, %33 : vector<1x256xi1>, vector<1x256xf32>
    %c0_5 = arith.constant 0 : index
    %35 = memref.load %arg3[%c0_5] : memref<144xf32, #tpu.memory_space<smem>>
    %36 = vector.broadcast %35 : f32 to vector<1x256xf32>
    %37 = arith.mulf %34, %36 : vector<1x256xf32>
    %38 = arith.addf %21, %37 : vector<1x256xf32>
    %c4 = arith.constant 4 : index
    %39 = memref.load %arg3[%c4] : memref<144xf32, #tpu.memory_space<smem>>
    %40 = vector.broadcast %39 : f32 to vector<1x256xf32>
    %41 = arith.mulf %34, %40 : vector<1x256xf32>
    %42 = arith.addf %24, %41 : vector<1x256xf32>
    %c8 = arith.constant 8 : index
    %43 = memref.load %arg3[%c8] : memref<144xf32, #tpu.memory_space<smem>>
    %44 = vector.broadcast %43 : f32 to vector<1x256xf32>
    %45 = arith.mulf %34, %44 : vector<1x256xf32>
    %46 = arith.addf %27, %45 : vector<1x256xf32>
    %c12 = arith.constant 12 : index
    %47 = memref.load %arg3[%c12] : memref<144xf32, #tpu.memory_space<smem>>
    %48 = vector.broadcast %47 : f32 to vector<1x256xf32>
    %49 = arith.mulf %34, %48 : vector<1x256xf32>
    %50 = arith.addf %30, %49 : vector<1x256xf32>
    %c17_i32_6 = arith.constant 17 : i32
    %51 = tpu.dynamic_rotate %4 by %c17_i32_6 dim 1 : vector<1x256xf32>, i32 -> vector<1x256xf32>
    %cst_7 = arith.constant 0.000000e+00 : f32
    %52 = vector.broadcast %cst_7 : f32 to vector<1x256xf32>
    %53 = arith.select %31, %51, %52 : vector<1x256xi1>, vector<1x256xf32>
    %c1_8 = arith.constant 1 : index
    %54 = memref.load %arg3[%c1_8] : memref<144xf32, #tpu.memory_space<smem>>
    %55 = vector.broadcast %54 : f32 to vector<1x256xf32>
    %56 = arith.mulf %53, %55 : vector<1x256xf32>
    %57 = arith.addf %38, %56 : vector<1x256xf32>
    %c5 = arith.constant 5 : index
    %58 = memref.load %arg3[%c5] : memref<144xf32, #tpu.memory_space<smem>>
    %59 = vector.broadcast %58 : f32 to vector<1x256xf32>
    %60 = arith.mulf %53, %59 : vector<1x256xf32>
    %61 = arith.addf %42, %60 : vector<1x256xf32>
    %c9 = arith.constant 9 : index
    %62 = memref.load %arg3[%c9] : memref<144xf32, #tpu.memory_space<smem>>
    %63 = vector.broadcast %62 : f32 to vector<1x256xf32>
    %64 = arith.mulf %53, %63 : vector<1x256xf32>
    %65 = arith.addf %46, %64 : vector<1x256xf32>
    %c13 = arith.constant 13 : index
    %66 = memref.load %arg3[%c13] : memref<144xf32, #tpu.memory_space<smem>>
    %67 = vector.broadcast %66 : f32 to vector<1x256xf32>
    %68 = arith.mulf %53, %67 : vector<1x256xf32>
    %69 = arith.addf %50, %68 : vector<1x256xf32>
    %c17_i32_9 = arith.constant 17 : i32
    %70 = tpu.dynamic_rotate %6 by %c17_i32_9 dim 1 : vector<1x256xf32>, i32 -> vector<1x256xf32>
    %cst_10 = arith.constant 0.000000e+00 : f32
    %71 = vector.broadcast %cst_10 : f32 to vector<1x256xf32>
    %72 = arith.select %31, %70, %71 : vector<1x256xi1>, vector<1x256xf32>
    %c2_11 = arith.constant 2 : index
    %73 = memref.load %arg3[%c2_11] : memref<144xf32, #tpu.memory_space<smem>>
    %74 = vector.broadcast %73 : f32 to vector<1x256xf32>
    %75 = arith.mulf %72, %74 : vector<1x256xf32>
    %76 = arith.addf %57, %75 : vector<1x256xf32>
    %c6 = arith.constant 6 : index
    %77 = memref.load %arg3[%c6] : memref<144xf32, #tpu.memory_space<smem>>
    %78 = vector.broadcast %77 : f32 to vector<1x256xf32>
    %79 = arith.mulf %72, %78 : vector<1x256xf32>
    %80 = arith.addf %61, %79 : vector<1x256xf32>
    %c10 = arith.constant 10 : index
    %81 = memref.load %arg3[%c10] : memref<144xf32, #tpu.memory_space<smem>>
    %82 = vector.broadcast %81 : f32 to vector<1x256xf32>
    %83 = arith.mulf %72, %82 : vector<1x256xf32>
    %84 = arith.addf %65, %83 : vector<1x256xf32>
    %c14 = arith.constant 14 : index
    %85 = memref.load %arg3[%c14] : memref<144xf32, #tpu.memory_space<smem>>
    %86 = vector.broadcast %85 : f32 to vector<1x256xf32>
    %87 = arith.mulf %72, %86 : vector<1x256xf32>
    %88 = arith.addf %69, %87 : vector<1x256xf32>
    %c17_i32_12 = arith.constant 17 : i32
    %89 = tpu.dynamic_rotate %8 by %c17_i32_12 dim 1 : vector<1x256xf32>, i32 -> vector<1x256xf32>
    %cst_13 = arith.constant 0.000000e+00 : f32
    %90 = vector.broadcast %cst_13 : f32 to vector<1x256xf32>
    %91 = arith.select %31, %89, %90 : vector<1x256xi1>, vector<1x256xf32>
    %c3_14 = arith.constant 3 : index
    %92 = memref.load %arg3[%c3_14] : memref<144xf32, #tpu.memory_space<smem>>
    %93 = vector.broadcast %92 : f32 to vector<1x256xf32>
    %94 = arith.mulf %91, %93 : vector<1x256xf32>
    %95 = arith.addf %76, %94 : vector<1x256xf32>
    %c7 = arith.constant 7 : index
    %96 = memref.load %arg3[%c7] : memref<144xf32, #tpu.memory_space<smem>>
    %97 = vector.broadcast %96 : f32 to vector<1x256xf32>
    %98 = arith.mulf %91, %97 : vector<1x256xf32>
    %99 = arith.addf %80, %98 : vector<1x256xf32>
    %c11 = arith.constant 11 : index
    %100 = memref.load %arg3[%c11] : memref<144xf32, #tpu.memory_space<smem>>
    %101 = vector.broadcast %100 : f32 to vector<1x256xf32>
    %102 = arith.mulf %91, %101 : vector<1x256xf32>
    %103 = arith.addf %84, %102 : vector<1x256xf32>
    %c15 = arith.constant 15 : index
    %104 = memref.load %arg3[%c15] : memref<144xf32, #tpu.memory_space<smem>>
    %105 = vector.broadcast %104 : f32 to vector<1x256xf32>
    %106 = arith.mulf %91, %105 : vector<1x256xf32>
    %107 = arith.addf %88, %106 : vector<1x256xf32>
    %c16_i32_15 = arith.constant 16 : i32
    %108 = tpu.dynamic_rotate %2 by %c16_i32_15 dim 1 : vector<1x256xf32>, i32 -> vector<1x256xf32>
    %cst_16 = arith.constant 0.000000e+00 : f32
    %109 = vector.broadcast %cst_16 : f32 to vector<1x256xf32>
    %110 = arith.select %16, %108, %109 : vector<1x256xi1>, vector<1x256xf32>
    %c16 = arith.constant 16 : index
    %111 = memref.load %arg3[%c16] : memref<144xf32, #tpu.memory_space<smem>>
    %112 = vector.broadcast %111 : f32 to vector<1x256xf32>
    %113 = arith.mulf %110, %112 : vector<1x256xf32>
    %114 = arith.addf %95, %113 : vector<1x256xf32>
    %c20 = arith.constant 20 : index
    %115 = memref.load %arg3[%c20] : memref<144xf32, #tpu.memory_space<smem>>
    %116 = vector.broadcast %115 : f32 to vector<1x256xf32>
    %117 = arith.mulf %110, %116 : vector<1x256xf32>
    %118 = arith.addf %99, %117 : vector<1x256xf32>
    %c24 = arith.constant 24 : index
    %119 = memref.load %arg3[%c24] : memref<144xf32, #tpu.memory_space<smem>>
    %120 = vector.broadcast %119 : f32 to vector<1x256xf32>
    %121 = arith.mulf %110, %120 : vector<1x256xf32>
    %122 = arith.addf %103, %121 : vector<1x256xf32>
    %c28 = arith.constant 28 : index
    %123 = memref.load %arg3[%c28] : memref<144xf32, #tpu.memory_space<smem>>
    %124 = vector.broadcast %123 : f32 to vector<1x256xf32>
    %125 = arith.mulf %110, %124 : vector<1x256xf32>
    %126 = arith.addf %107, %125 : vector<1x256xf32>
    %c16_i32_17 = arith.constant 16 : i32
    %127 = tpu.dynamic_rotate %4 by %c16_i32_17 dim 1 : vector<1x256xf32>, i32 -> vector<1x256xf32>
    %cst_18 = arith.constant 0.000000e+00 : f32
    %128 = vector.broadcast %cst_18 : f32 to vector<1x256xf32>
    %129 = arith.select %16, %127, %128 : vector<1x256xi1>, vector<1x256xf32>
    %c17 = arith.constant 17 : index
    %130 = memref.load %arg3[%c17] : memref<144xf32, #tpu.memory_space<smem>>
    %131 = vector.broadcast %130 : f32 to vector<1x256xf32>
    %132 = arith.mulf %129, %131 : vector<1x256xf32>
    %133 = arith.addf %114, %132 : vector<1x256xf32>
    %c21 = arith.constant 21 : index
    %134 = memref.load %arg3[%c21] : memref<144xf32, #tpu.memory_space<smem>>
    %135 = vector.broadcast %134 : f32 to vector<1x256xf32>
    %136 = arith.mulf %129, %135 : vector<1x256xf32>
    %137 = arith.addf %118, %136 : vector<1x256xf32>
    %c25 = arith.constant 25 : index
    %138 = memref.load %arg3[%c25] : memref<144xf32, #tpu.memory_space<smem>>
    %139 = vector.broadcast %138 : f32 to vector<1x256xf32>
    %140 = arith.mulf %129, %139 : vector<1x256xf32>
    %141 = arith.addf %122, %140 : vector<1x256xf32>
    %c29 = arith.constant 29 : index
    %142 = memref.load %arg3[%c29] : memref<144xf32, #tpu.memory_space<smem>>
    %143 = vector.broadcast %142 : f32 to vector<1x256xf32>
    %144 = arith.mulf %129, %143 : vector<1x256xf32>
    %145 = arith.addf %126, %144 : vector<1x256xf32>
    %c16_i32_19 = arith.constant 16 : i32
    %146 = tpu.dynamic_rotate %6 by %c16_i32_19 dim 1 : vector<1x256xf32>, i32 -> vector<1x256xf32>
    %cst_20 = arith.constant 0.000000e+00 : f32
    %147 = vector.broadcast %cst_20 : f32 to vector<1x256xf32>
    %148 = arith.select %16, %146, %147 : vector<1x256xi1>, vector<1x256xf32>
    %c18 = arith.constant 18 : index
    %149 = memref.load %arg3[%c18] : memref<144xf32, #tpu.memory_space<smem>>
    %150 = vector.broadcast %149 : f32 to vector<1x256xf32>
    %151 = arith.mulf %148, %150 : vector<1x256xf32>
    %152 = arith.addf %133, %151 : vector<1x256xf32>
    %c22 = arith.constant 22 : index
    %153 = memref.load %arg3[%c22] : memref<144xf32, #tpu.memory_space<smem>>
    %154 = vector.broadcast %153 : f32 to vector<1x256xf32>
    %155 = arith.mulf %148, %154 : vector<1x256xf32>
    %156 = arith.addf %137, %155 : vector<1x256xf32>
    %c26 = arith.constant 26 : index
    %157 = memref.load %arg3[%c26] : memref<144xf32, #tpu.memory_space<smem>>
    %158 = vector.broadcast %157 : f32 to vector<1x256xf32>
    %159 = arith.mulf %148, %158 : vector<1x256xf32>
    %160 = arith.addf %141, %159 : vector<1x256xf32>
    %c30 = arith.constant 30 : index
    %161 = memref.load %arg3[%c30] : memref<144xf32, #tpu.memory_space<smem>>
    %162 = vector.broadcast %161 : f32 to vector<1x256xf32>
    %163 = arith.mulf %148, %162 : vector<1x256xf32>
    %164 = arith.addf %145, %163 : vector<1x256xf32>
    %c16_i32_21 = arith.constant 16 : i32
    %165 = tpu.dynamic_rotate %8 by %c16_i32_21 dim 1 : vector<1x256xf32>, i32 -> vector<1x256xf32>
    %cst_22 = arith.constant 0.000000e+00 : f32
    %166 = vector.broadcast %cst_22 : f32 to vector<1x256xf32>
    %167 = arith.select %16, %165, %166 : vector<1x256xi1>, vector<1x256xf32>
    %c19 = arith.constant 19 : index
    %168 = memref.load %arg3[%c19] : memref<144xf32, #tpu.memory_space<smem>>
    %169 = vector.broadcast %168 : f32 to vector<1x256xf32>
    %170 = arith.mulf %167, %169 : vector<1x256xf32>
    %171 = arith.addf %152, %170 : vector<1x256xf32>
    %c23 = arith.constant 23 : index
    %172 = memref.load %arg3[%c23] : memref<144xf32, #tpu.memory_space<smem>>
    %173 = vector.broadcast %172 : f32 to vector<1x256xf32>
    %174 = arith.mulf %167, %173 : vector<1x256xf32>
    %175 = arith.addf %156, %174 : vector<1x256xf32>
    %c27 = arith.constant 27 : index
    %176 = memref.load %arg3[%c27] : memref<144xf32, #tpu.memory_space<smem>>
    %177 = vector.broadcast %176 : f32 to vector<1x256xf32>
    %178 = arith.mulf %167, %177 : vector<1x256xf32>
    %179 = arith.addf %160, %178 : vector<1x256xf32>
    %c31 = arith.constant 31 : index
    %180 = memref.load %arg3[%c31] : memref<144xf32, #tpu.memory_space<smem>>
    %181 = vector.broadcast %180 : f32 to vector<1x256xf32>
    %182 = arith.mulf %167, %181 : vector<1x256xf32>
    %183 = arith.addf %164, %182 : vector<1x256xf32>
    %184 = arith.andi %14, %16 : vector<1x256xi1>
    %c15_i32 = arith.constant 15 : i32
    %185 = tpu.dynamic_rotate %2 by %c15_i32 dim 1 : vector<1x256xf32>, i32 -> vector<1x256xf32>
    %cst_23 = arith.constant 0.000000e+00 : f32
    %186 = vector.broadcast %cst_23 : f32 to vector<1x256xf32>
    %187 = arith.select %184, %185, %186 : vector<1x256xi1>, vector<1x256xf32>
    %c32 = arith.constant 32 : index
    %188 = memref.load %arg3[%c32] : memref<144xf32, #tpu.memory_space<smem>>
    %189 = vector.broadcast %188 : f32 to vector<1x256xf32>
    %190 = arith.mulf %187, %189 : vector<1x256xf32>
    %191 = arith.addf %171, %190 : vector<1x256xf32>
    %c36 = arith.constant 36 : index
    %192 = memref.load %arg3[%c36] : memref<144xf32, #tpu.memory_space<smem>>
    %193 = vector.broadcast %192 : f32 to vector<1x256xf32>
    %194 = arith.mulf %187, %193 : vector<1x256xf32>
    %195 = arith.addf %175, %194 : vector<1x256xf32>
    %c40 = arith.constant 40 : index
    %196 = memref.load %arg3[%c40] : memref<144xf32, #tpu.memory_space<smem>>
    %197 = vector.broadcast %196 : f32 to vector<1x256xf32>
    %198 = arith.mulf %187, %197 : vector<1x256xf32>
    %199 = arith.addf %179, %198 : vector<1x256xf32>
    %c44 = arith.constant 44 : index
    %200 = memref.load %arg3[%c44] : memref<144xf32, #tpu.memory_space<smem>>
    %201 = vector.broadcast %200 : f32 to vector<1x256xf32>
    %202 = arith.mulf %187, %201 : vector<1x256xf32>
    %203 = arith.addf %183, %202 : vector<1x256xf32>
    %c15_i32_24 = arith.constant 15 : i32
    %204 = tpu.dynamic_rotate %4 by %c15_i32_24 dim 1 : vector<1x256xf32>, i32 -> vector<1x256xf32>
    %cst_25 = arith.constant 0.000000e+00 : f32
    %205 = vector.broadcast %cst_25 : f32 to vector<1x256xf32>
    %206 = arith.select %184, %204, %205 : vector<1x256xi1>, vector<1x256xf32>
    %c33 = arith.constant 33 : index
    %207 = memref.load %arg3[%c33] : memref<144xf32, #tpu.memory_space<smem>>
    %208 = vector.broadcast %207 : f32 to vector<1x256xf32>
    %209 = arith.mulf %206, %208 : vector<1x256xf32>
    %210 = arith.addf %191, %209 : vector<1x256xf32>
    %c37 = arith.constant 37 : index
    %211 = memref.load %arg3[%c37] : memref<144xf32, #tpu.memory_space<smem>>
    %212 = vector.broadcast %211 : f32 to vector<1x256xf32>
    %213 = arith.mulf %206, %212 : vector<1x256xf32>
    %214 = arith.addf %195, %213 : vector<1x256xf32>
    %c41 = arith.constant 41 : index
    %215 = memref.load %arg3[%c41] : memref<144xf32, #tpu.memory_space<smem>>
    %216 = vector.broadcast %215 : f32 to vector<1x256xf32>
    %217 = arith.mulf %206, %216 : vector<1x256xf32>
    %218 = arith.addf %199, %217 : vector<1x256xf32>
    %c45 = arith.constant 45 : index
    %219 = memref.load %arg3[%c45] : memref<144xf32, #tpu.memory_space<smem>>
    %220 = vector.broadcast %219 : f32 to vector<1x256xf32>
    %221 = arith.mulf %206, %220 : vector<1x256xf32>
    %222 = arith.addf %203, %221 : vector<1x256xf32>
    %c15_i32_26 = arith.constant 15 : i32
    %223 = tpu.dynamic_rotate %6 by %c15_i32_26 dim 1 : vector<1x256xf32>, i32 -> vector<1x256xf32>
    %cst_27 = arith.constant 0.000000e+00 : f32
    %224 = vector.broadcast %cst_27 : f32 to vector<1x256xf32>
    %225 = arith.select %184, %223, %224 : vector<1x256xi1>, vector<1x256xf32>
    %c34 = arith.constant 34 : index
    %226 = memref.load %arg3[%c34] : memref<144xf32, #tpu.memory_space<smem>>
    %227 = vector.broadcast %226 : f32 to vector<1x256xf32>
    %228 = arith.mulf %225, %227 : vector<1x256xf32>
    %229 = arith.addf %210, %228 : vector<1x256xf32>
    %c38 = arith.constant 38 : index
    %230 = memref.load %arg3[%c38] : memref<144xf32, #tpu.memory_space<smem>>
    %231 = vector.broadcast %230 : f32 to vector<1x256xf32>
    %232 = arith.mulf %225, %231 : vector<1x256xf32>
    %233 = arith.addf %214, %232 : vector<1x256xf32>
    %c42 = arith.constant 42 : index
    %234 = memref.load %arg3[%c42] : memref<144xf32, #tpu.memory_space<smem>>
    %235 = vector.broadcast %234 : f32 to vector<1x256xf32>
    %236 = arith.mulf %225, %235 : vector<1x256xf32>
    %237 = arith.addf %218, %236 : vector<1x256xf32>
    %c46 = arith.constant 46 : index
    %238 = memref.load %arg3[%c46] : memref<144xf32, #tpu.memory_space<smem>>
    %239 = vector.broadcast %238 : f32 to vector<1x256xf32>
    %240 = arith.mulf %225, %239 : vector<1x256xf32>
    %241 = arith.addf %222, %240 : vector<1x256xf32>
    %c15_i32_28 = arith.constant 15 : i32
    %242 = tpu.dynamic_rotate %8 by %c15_i32_28 dim 1 : vector<1x256xf32>, i32 -> vector<1x256xf32>
    %cst_29 = arith.constant 0.000000e+00 : f32
    %243 = vector.broadcast %cst_29 : f32 to vector<1x256xf32>
    %244 = arith.select %184, %242, %243 : vector<1x256xi1>, vector<1x256xf32>
    %c35 = arith.constant 35 : index
    %245 = memref.load %arg3[%c35] : memref<144xf32, #tpu.memory_space<smem>>
    %246 = vector.broadcast %245 : f32 to vector<1x256xf32>
    %247 = arith.mulf %244, %246 : vector<1x256xf32>
    %248 = arith.addf %229, %247 : vector<1x256xf32>
    %c39 = arith.constant 39 : index
    %249 = memref.load %arg3[%c39] : memref<144xf32, #tpu.memory_space<smem>>
    %250 = vector.broadcast %249 : f32 to vector<1x256xf32>
    %251 = arith.mulf %244, %250 : vector<1x256xf32>
    %252 = arith.addf %233, %251 : vector<1x256xf32>
    %c43 = arith.constant 43 : index
    %253 = memref.load %arg3[%c43] : memref<144xf32, #tpu.memory_space<smem>>
    %254 = vector.broadcast %253 : f32 to vector<1x256xf32>
    %255 = arith.mulf %244, %254 : vector<1x256xf32>
    %256 = arith.addf %237, %255 : vector<1x256xf32>
    %c47 = arith.constant 47 : index
    %257 = memref.load %arg3[%c47] : memref<144xf32, #tpu.memory_space<smem>>
    %258 = vector.broadcast %257 : f32 to vector<1x256xf32>
    %259 = arith.mulf %244, %258 : vector<1x256xf32>
    %260 = arith.addf %241, %259 : vector<1x256xf32>
    %c1_i32_30 = arith.constant 1 : i32
    %261 = tpu.dynamic_rotate %2 by %c1_i32_30 dim 1 : vector<1x256xf32>, i32 -> vector<1x256xf32>
    %cst_31 = arith.constant 0.000000e+00 : f32
    %262 = vector.broadcast %cst_31 : f32 to vector<1x256xf32>
    %263 = arith.select %12, %261, %262 : vector<1x256xi1>, vector<1x256xf32>
    %c48 = arith.constant 48 : index
    %264 = memref.load %arg3[%c48] : memref<144xf32, #tpu.memory_space<smem>>
    %265 = vector.broadcast %264 : f32 to vector<1x256xf32>
    %266 = arith.mulf %263, %265 : vector<1x256xf32>
    %267 = arith.addf %248, %266 : vector<1x256xf32>
    %c52 = arith.constant 52 : index
    %268 = memref.load %arg3[%c52] : memref<144xf32, #tpu.memory_space<smem>>
    %269 = vector.broadcast %268 : f32 to vector<1x256xf32>
    %270 = arith.mulf %263, %269 : vector<1x256xf32>
    %271 = arith.addf %252, %270 : vector<1x256xf32>
    %c56 = arith.constant 56 : index
    %272 = memref.load %arg3[%c56] : memref<144xf32, #tpu.memory_space<smem>>
    %273 = vector.broadcast %272 : f32 to vector<1x256xf32>
    %274 = arith.mulf %263, %273 : vector<1x256xf32>
    %275 = arith.addf %256, %274 : vector<1x256xf32>
    %c60 = arith.constant 60 : index
    %276 = memref.load %arg3[%c60] : memref<144xf32, #tpu.memory_space<smem>>
    %277 = vector.broadcast %276 : f32 to vector<1x256xf32>
    %278 = arith.mulf %263, %277 : vector<1x256xf32>
    %279 = arith.addf %260, %278 : vector<1x256xf32>
    %c1_i32_32 = arith.constant 1 : i32
    %280 = tpu.dynamic_rotate %4 by %c1_i32_32 dim 1 : vector<1x256xf32>, i32 -> vector<1x256xf32>
    %cst_33 = arith.constant 0.000000e+00 : f32
    %281 = vector.broadcast %cst_33 : f32 to vector<1x256xf32>
    %282 = arith.select %12, %280, %281 : vector<1x256xi1>, vector<1x256xf32>
    %c49 = arith.constant 49 : index
    %283 = memref.load %arg3[%c49] : memref<144xf32, #tpu.memory_space<smem>>
    %284 = vector.broadcast %283 : f32 to vector<1x256xf32>
    %285 = arith.mulf %282, %284 : vector<1x256xf32>
    %286 = arith.addf %267, %285 : vector<1x256xf32>
    %c53 = arith.constant 53 : index
    %287 = memref.load %arg3[%c53] : memref<144xf32, #tpu.memory_space<smem>>
    %288 = vector.broadcast %287 : f32 to vector<1x256xf32>
    %289 = arith.mulf %282, %288 : vector<1x256xf32>
    %290 = arith.addf %271, %289 : vector<1x256xf32>
    %c57 = arith.constant 57 : index
    %291 = memref.load %arg3[%c57] : memref<144xf32, #tpu.memory_space<smem>>
    %292 = vector.broadcast %291 : f32 to vector<1x256xf32>
    %293 = arith.mulf %282, %292 : vector<1x256xf32>
    %294 = arith.addf %275, %293 : vector<1x256xf32>
    %c61 = arith.constant 61 : index
    %295 = memref.load %arg3[%c61] : memref<144xf32, #tpu.memory_space<smem>>
    %296 = vector.broadcast %295 : f32 to vector<1x256xf32>
    %297 = arith.mulf %282, %296 : vector<1x256xf32>
    %298 = arith.addf %279, %297 : vector<1x256xf32>
    %c1_i32_34 = arith.constant 1 : i32
    %299 = tpu.dynamic_rotate %6 by %c1_i32_34 dim 1 : vector<1x256xf32>, i32 -> vector<1x256xf32>
    %cst_35 = arith.constant 0.000000e+00 : f32
    %300 = vector.broadcast %cst_35 : f32 to vector<1x256xf32>
    %301 = arith.select %12, %299, %300 : vector<1x256xi1>, vector<1x256xf32>
    %c50 = arith.constant 50 : index
    %302 = memref.load %arg3[%c50] : memref<144xf32, #tpu.memory_space<smem>>
    %303 = vector.broadcast %302 : f32 to vector<1x256xf32>
    %304 = arith.mulf %301, %303 : vector<1x256xf32>
    %305 = arith.addf %286, %304 : vector<1x256xf32>
    %c54 = arith.constant 54 : index
    %306 = memref.load %arg3[%c54] : memref<144xf32, #tpu.memory_space<smem>>
    %307 = vector.broadcast %306 : f32 to vector<1x256xf32>
    %308 = arith.mulf %301, %307 : vector<1x256xf32>
    %309 = arith.addf %290, %308 : vector<1x256xf32>
    %c58 = arith.constant 58 : index
    %310 = memref.load %arg3[%c58] : memref<144xf32, #tpu.memory_space<smem>>
    %311 = vector.broadcast %310 : f32 to vector<1x256xf32>
    %312 = arith.mulf %301, %311 : vector<1x256xf32>
    %313 = arith.addf %294, %312 : vector<1x256xf32>
    %c62 = arith.constant 62 : index
    %314 = memref.load %arg3[%c62] : memref<144xf32, #tpu.memory_space<smem>>
    %315 = vector.broadcast %314 : f32 to vector<1x256xf32>
    %316 = arith.mulf %301, %315 : vector<1x256xf32>
    %317 = arith.addf %298, %316 : vector<1x256xf32>
    %c1_i32_36 = arith.constant 1 : i32
    %318 = tpu.dynamic_rotate %8 by %c1_i32_36 dim 1 : vector<1x256xf32>, i32 -> vector<1x256xf32>
    %cst_37 = arith.constant 0.000000e+00 : f32
    %319 = vector.broadcast %cst_37 : f32 to vector<1x256xf32>
    %320 = arith.select %12, %318, %319 : vector<1x256xi1>, vector<1x256xf32>
    %c51 = arith.constant 51 : index
    %321 = memref.load %arg3[%c51] : memref<144xf32, #tpu.memory_space<smem>>
    %322 = vector.broadcast %321 : f32 to vector<1x256xf32>
    %323 = arith.mulf %320, %322 : vector<1x256xf32>
    %324 = arith.addf %305, %323 : vector<1x256xf32>
    %c55 = arith.constant 55 : index
    %325 = memref.load %arg3[%c55] : memref<144xf32, #tpu.memory_space<smem>>
    %326 = vector.broadcast %325 : f32 to vector<1x256xf32>
    %327 = arith.mulf %320, %326 : vector<1x256xf32>
    %328 = arith.addf %309, %327 : vector<1x256xf32>
    %c59 = arith.constant 59 : index
    %329 = memref.load %arg3[%c59] : memref<144xf32, #tpu.memory_space<smem>>
    %330 = vector.broadcast %329 : f32 to vector<1x256xf32>
    %331 = arith.mulf %320, %330 : vector<1x256xf32>
    %332 = arith.addf %313, %331 : vector<1x256xf32>
    %c63 = arith.constant 63 : index
    %333 = memref.load %arg3[%c63] : memref<144xf32, #tpu.memory_space<smem>>
    %334 = vector.broadcast %333 : f32 to vector<1x256xf32>
    %335 = arith.mulf %320, %334 : vector<1x256xf32>
    %336 = arith.addf %317, %335 : vector<1x256xf32>
    %c64 = arith.constant 64 : index
    %337 = memref.load %arg3[%c64] : memref<144xf32, #tpu.memory_space<smem>>
    %338 = vector.broadcast %337 : f32 to vector<1x256xf32>
    %339 = arith.mulf %2, %338 : vector<1x256xf32>
    %340 = arith.addf %324, %339 : vector<1x256xf32>
    %c68 = arith.constant 68 : index
    %341 = memref.load %arg3[%c68] : memref<144xf32, #tpu.memory_space<smem>>
    %342 = vector.broadcast %341 : f32 to vector<1x256xf32>
    %343 = arith.mulf %2, %342 : vector<1x256xf32>
    %344 = arith.addf %328, %343 : vector<1x256xf32>
    %c72 = arith.constant 72 : index
    %345 = memref.load %arg3[%c72] : memref<144xf32, #tpu.memory_space<smem>>
    %346 = vector.broadcast %345 : f32 to vector<1x256xf32>
    %347 = arith.mulf %2, %346 : vector<1x256xf32>
    %348 = arith.addf %332, %347 : vector<1x256xf32>
    %c76 = arith.constant 76 : index
    %349 = memref.load %arg3[%c76] : memref<144xf32, #tpu.memory_space<smem>>
    %350 = vector.broadcast %349 : f32 to vector<1x256xf32>
    %351 = arith.mulf %2, %350 : vector<1x256xf32>
    %352 = arith.addf %336, %351 : vector<1x256xf32>
    %c65 = arith.constant 65 : index
    %353 = memref.load %arg3[%c65] : memref<144xf32, #tpu.memory_space<smem>>
    %354 = vector.broadcast %353 : f32 to vector<1x256xf32>
    %355 = arith.mulf %4, %354 : vector<1x256xf32>
    %356 = arith.addf %340, %355 : vector<1x256xf32>
    %c69 = arith.constant 69 : index
    %357 = memref.load %arg3[%c69] : memref<144xf32, #tpu.memory_space<smem>>
    %358 = vector.broadcast %357 : f32 to vector<1x256xf32>
    %359 = arith.mulf %4, %358 : vector<1x256xf32>
    %360 = arith.addf %344, %359 : vector<1x256xf32>
    %c73 = arith.constant 73 : index
    %361 = memref.load %arg3[%c73] : memref<144xf32, #tpu.memory_space<smem>>
    %362 = vector.broadcast %361 : f32 to vector<1x256xf32>
    %363 = arith.mulf %4, %362 : vector<1x256xf32>
    %364 = arith.addf %348, %363 : vector<1x256xf32>
    %c77 = arith.constant 77 : index
    %365 = memref.load %arg3[%c77] : memref<144xf32, #tpu.memory_space<smem>>
    %366 = vector.broadcast %365 : f32 to vector<1x256xf32>
    %367 = arith.mulf %4, %366 : vector<1x256xf32>
    %368 = arith.addf %352, %367 : vector<1x256xf32>
    %c66 = arith.constant 66 : index
    %369 = memref.load %arg3[%c66] : memref<144xf32, #tpu.memory_space<smem>>
    %370 = vector.broadcast %369 : f32 to vector<1x256xf32>
    %371 = arith.mulf %6, %370 : vector<1x256xf32>
    %372 = arith.addf %356, %371 : vector<1x256xf32>
    %c70 = arith.constant 70 : index
    %373 = memref.load %arg3[%c70] : memref<144xf32, #tpu.memory_space<smem>>
    %374 = vector.broadcast %373 : f32 to vector<1x256xf32>
    %375 = arith.mulf %6, %374 : vector<1x256xf32>
    %376 = arith.addf %360, %375 : vector<1x256xf32>
    %c74 = arith.constant 74 : index
    %377 = memref.load %arg3[%c74] : memref<144xf32, #tpu.memory_space<smem>>
    %378 = vector.broadcast %377 : f32 to vector<1x256xf32>
    %379 = arith.mulf %6, %378 : vector<1x256xf32>
    %380 = arith.addf %364, %379 : vector<1x256xf32>
    %c78 = arith.constant 78 : index
    %381 = memref.load %arg3[%c78] : memref<144xf32, #tpu.memory_space<smem>>
    %382 = vector.broadcast %381 : f32 to vector<1x256xf32>
    %383 = arith.mulf %6, %382 : vector<1x256xf32>
    %384 = arith.addf %368, %383 : vector<1x256xf32>
    %c67 = arith.constant 67 : index
    %385 = memref.load %arg3[%c67] : memref<144xf32, #tpu.memory_space<smem>>
    %386 = vector.broadcast %385 : f32 to vector<1x256xf32>
    %387 = arith.mulf %8, %386 : vector<1x256xf32>
    %388 = arith.addf %372, %387 : vector<1x256xf32>
    %c71 = arith.constant 71 : index
    %389 = memref.load %arg3[%c71] : memref<144xf32, #tpu.memory_space<smem>>
    %390 = vector.broadcast %389 : f32 to vector<1x256xf32>
    %391 = arith.mulf %8, %390 : vector<1x256xf32>
    %392 = arith.addf %376, %391 : vector<1x256xf32>
    %c75 = arith.constant 75 : index
    %393 = memref.load %arg3[%c75] : memref<144xf32, #tpu.memory_space<smem>>
    %394 = vector.broadcast %393 : f32 to vector<1x256xf32>
    %395 = arith.mulf %8, %394 : vector<1x256xf32>
    %396 = arith.addf %380, %395 : vector<1x256xf32>
    %c79 = arith.constant 79 : index
    %397 = memref.load %arg3[%c79] : memref<144xf32, #tpu.memory_space<smem>>
    %398 = vector.broadcast %397 : f32 to vector<1x256xf32>
    %399 = arith.mulf %8, %398 : vector<1x256xf32>
    %400 = arith.addf %384, %399 : vector<1x256xf32>
    %c255_i32 = arith.constant 255 : i32
    %401 = tpu.dynamic_rotate %2 by %c255_i32 dim 1 : vector<1x256xf32>, i32 -> vector<1x256xf32>
    %cst_38 = arith.constant 0.000000e+00 : f32
    %402 = vector.broadcast %cst_38 : f32 to vector<1x256xf32>
    %403 = arith.select %14, %401, %402 : vector<1x256xi1>, vector<1x256xf32>
    %c80 = arith.constant 80 : index
    %404 = memref.load %arg3[%c80] : memref<144xf32, #tpu.memory_space<smem>>
    %405 = vector.broadcast %404 : f32 to vector<1x256xf32>
    %406 = arith.mulf %403, %405 : vector<1x256xf32>
    %407 = arith.addf %388, %406 : vector<1x256xf32>
    %c84 = arith.constant 84 : index
    %408 = memref.load %arg3[%c84] : memref<144xf32, #tpu.memory_space<smem>>
    %409 = vector.broadcast %408 : f32 to vector<1x256xf32>
    %410 = arith.mulf %403, %409 : vector<1x256xf32>
    %411 = arith.addf %392, %410 : vector<1x256xf32>
    %c88 = arith.constant 88 : index
    %412 = memref.load %arg3[%c88] : memref<144xf32, #tpu.memory_space<smem>>
    %413 = vector.broadcast %412 : f32 to vector<1x256xf32>
    %414 = arith.mulf %403, %413 : vector<1x256xf32>
    %415 = arith.addf %396, %414 : vector<1x256xf32>
    %c92 = arith.constant 92 : index
    %416 = memref.load %arg3[%c92] : memref<144xf32, #tpu.memory_space<smem>>
    %417 = vector.broadcast %416 : f32 to vector<1x256xf32>
    %418 = arith.mulf %403, %417 : vector<1x256xf32>
    %419 = arith.addf %400, %418 : vector<1x256xf32>
    %c255_i32_39 = arith.constant 255 : i32
    %420 = tpu.dynamic_rotate %4 by %c255_i32_39 dim 1 : vector<1x256xf32>, i32 -> vector<1x256xf32>
    %cst_40 = arith.constant 0.000000e+00 : f32
    %421 = vector.broadcast %cst_40 : f32 to vector<1x256xf32>
    %422 = arith.select %14, %420, %421 : vector<1x256xi1>, vector<1x256xf32>
    %c81 = arith.constant 81 : index
    %423 = memref.load %arg3[%c81] : memref<144xf32, #tpu.memory_space<smem>>
    %424 = vector.broadcast %423 : f32 to vector<1x256xf32>
    %425 = arith.mulf %422, %424 : vector<1x256xf32>
    %426 = arith.addf %407, %425 : vector<1x256xf32>
    %c85 = arith.constant 85 : index
    %427 = memref.load %arg3[%c85] : memref<144xf32, #tpu.memory_space<smem>>
    %428 = vector.broadcast %427 : f32 to vector<1x256xf32>
    %429 = arith.mulf %422, %428 : vector<1x256xf32>
    %430 = arith.addf %411, %429 : vector<1x256xf32>
    %c89 = arith.constant 89 : index
    %431 = memref.load %arg3[%c89] : memref<144xf32, #tpu.memory_space<smem>>
    %432 = vector.broadcast %431 : f32 to vector<1x256xf32>
    %433 = arith.mulf %422, %432 : vector<1x256xf32>
    %434 = arith.addf %415, %433 : vector<1x256xf32>
    %c93 = arith.constant 93 : index
    %435 = memref.load %arg3[%c93] : memref<144xf32, #tpu.memory_space<smem>>
    %436 = vector.broadcast %435 : f32 to vector<1x256xf32>
    %437 = arith.mulf %422, %436 : vector<1x256xf32>
    %438 = arith.addf %419, %437 : vector<1x256xf32>
    %c255_i32_41 = arith.constant 255 : i32
    %439 = tpu.dynamic_rotate %6 by %c255_i32_41 dim 1 : vector<1x256xf32>, i32 -> vector<1x256xf32>
    %cst_42 = arith.constant 0.000000e+00 : f32
    %440 = vector.broadcast %cst_42 : f32 to vector<1x256xf32>
    %441 = arith.select %14, %439, %440 : vector<1x256xi1>, vector<1x256xf32>
    %c82 = arith.constant 82 : index
    %442 = memref.load %arg3[%c82] : memref<144xf32, #tpu.memory_space<smem>>
    %443 = vector.broadcast %442 : f32 to vector<1x256xf32>
    %444 = arith.mulf %441, %443 : vector<1x256xf32>
    %445 = arith.addf %426, %444 : vector<1x256xf32>
    %c86 = arith.constant 86 : index
    %446 = memref.load %arg3[%c86] : memref<144xf32, #tpu.memory_space<smem>>
    %447 = vector.broadcast %446 : f32 to vector<1x256xf32>
    %448 = arith.mulf %441, %447 : vector<1x256xf32>
    %449 = arith.addf %430, %448 : vector<1x256xf32>
    %c90 = arith.constant 90 : index
    %450 = memref.load %arg3[%c90] : memref<144xf32, #tpu.memory_space<smem>>
    %451 = vector.broadcast %450 : f32 to vector<1x256xf32>
    %452 = arith.mulf %441, %451 : vector<1x256xf32>
    %453 = arith.addf %434, %452 : vector<1x256xf32>
    %c94 = arith.constant 94 : index
    %454 = memref.load %arg3[%c94] : memref<144xf32, #tpu.memory_space<smem>>
    %455 = vector.broadcast %454 : f32 to vector<1x256xf32>
    %456 = arith.mulf %441, %455 : vector<1x256xf32>
    %457 = arith.addf %438, %456 : vector<1x256xf32>
    %c255_i32_43 = arith.constant 255 : i32
    %458 = tpu.dynamic_rotate %8 by %c255_i32_43 dim 1 : vector<1x256xf32>, i32 -> vector<1x256xf32>
    %cst_44 = arith.constant 0.000000e+00 : f32
    %459 = vector.broadcast %cst_44 : f32 to vector<1x256xf32>
    %460 = arith.select %14, %458, %459 : vector<1x256xi1>, vector<1x256xf32>
    %c83 = arith.constant 83 : index
    %461 = memref.load %arg3[%c83] : memref<144xf32, #tpu.memory_space<smem>>
    %462 = vector.broadcast %461 : f32 to vector<1x256xf32>
    %463 = arith.mulf %460, %462 : vector<1x256xf32>
    %464 = arith.addf %445, %463 : vector<1x256xf32>
    %c87 = arith.constant 87 : index
    %465 = memref.load %arg3[%c87] : memref<144xf32, #tpu.memory_space<smem>>
    %466 = vector.broadcast %465 : f32 to vector<1x256xf32>
    %467 = arith.mulf %460, %466 : vector<1x256xf32>
    %468 = arith.addf %449, %467 : vector<1x256xf32>
    %c91 = arith.constant 91 : index
    %469 = memref.load %arg3[%c91] : memref<144xf32, #tpu.memory_space<smem>>
    %470 = vector.broadcast %469 : f32 to vector<1x256xf32>
    %471 = arith.mulf %460, %470 : vector<1x256xf32>
    %472 = arith.addf %453, %471 : vector<1x256xf32>
    %c95 = arith.constant 95 : index
    %473 = memref.load %arg3[%c95] : memref<144xf32, #tpu.memory_space<smem>>
    %474 = vector.broadcast %473 : f32 to vector<1x256xf32>
    %475 = arith.mulf %460, %474 : vector<1x256xf32>
    %476 = arith.addf %457, %475 : vector<1x256xf32>
    %477 = arith.andi %12, %18 : vector<1x256xi1>
    %c241_i32 = arith.constant 241 : i32
    %478 = tpu.dynamic_rotate %2 by %c241_i32 dim 1 : vector<1x256xf32>, i32 -> vector<1x256xf32>
    %cst_45 = arith.constant 0.000000e+00 : f32
    %479 = vector.broadcast %cst_45 : f32 to vector<1x256xf32>
    %480 = arith.select %477, %478, %479 : vector<1x256xi1>, vector<1x256xf32>
    %c96 = arith.constant 96 : index
    %481 = memref.load %arg3[%c96] : memref<144xf32, #tpu.memory_space<smem>>
    %482 = vector.broadcast %481 : f32 to vector<1x256xf32>
    %483 = arith.mulf %480, %482 : vector<1x256xf32>
    %484 = arith.addf %464, %483 : vector<1x256xf32>
    %c100 = arith.constant 100 : index
    %485 = memref.load %arg3[%c100] : memref<144xf32, #tpu.memory_space<smem>>
    %486 = vector.broadcast %485 : f32 to vector<1x256xf32>
    %487 = arith.mulf %480, %486 : vector<1x256xf32>
    %488 = arith.addf %468, %487 : vector<1x256xf32>
    %c104 = arith.constant 104 : index
    %489 = memref.load %arg3[%c104] : memref<144xf32, #tpu.memory_space<smem>>
    %490 = vector.broadcast %489 : f32 to vector<1x256xf32>
    %491 = arith.mulf %480, %490 : vector<1x256xf32>
    %492 = arith.addf %472, %491 : vector<1x256xf32>
    %c108 = arith.constant 108 : index
    %493 = memref.load %arg3[%c108] : memref<144xf32, #tpu.memory_space<smem>>
    %494 = vector.broadcast %493 : f32 to vector<1x256xf32>
    %495 = arith.mulf %480, %494 : vector<1x256xf32>
    %496 = arith.addf %476, %495 : vector<1x256xf32>
    %c241_i32_46 = arith.constant 241 : i32
    %497 = tpu.dynamic_rotate %4 by %c241_i32_46 dim 1 : vector<1x256xf32>, i32 -> vector<1x256xf32>
    %cst_47 = arith.constant 0.000000e+00 : f32
    %498 = vector.broadcast %cst_47 : f32 to vector<1x256xf32>
    %499 = arith.select %477, %497, %498 : vector<1x256xi1>, vector<1x256xf32>
    %c97 = arith.constant 97 : index
    %500 = memref.load %arg3[%c97] : memref<144xf32, #tpu.memory_space<smem>>
    %501 = vector.broadcast %500 : f32 to vector<1x256xf32>
    %502 = arith.mulf %499, %501 : vector<1x256xf32>
    %503 = arith.addf %484, %502 : vector<1x256xf32>
    %c101 = arith.constant 101 : index
    %504 = memref.load %arg3[%c101] : memref<144xf32, #tpu.memory_space<smem>>
    %505 = vector.broadcast %504 : f32 to vector<1x256xf32>
    %506 = arith.mulf %499, %505 : vector<1x256xf32>
    %507 = arith.addf %488, %506 : vector<1x256xf32>
    %c105 = arith.constant 105 : index
    %508 = memref.load %arg3[%c105] : memref<144xf32, #tpu.memory_space<smem>>
    %509 = vector.broadcast %508 : f32 to vector<1x256xf32>
    %510 = arith.mulf %499, %509 : vector<1x256xf32>
    %511 = arith.addf %492, %510 : vector<1x256xf32>
    %c109 = arith.constant 109 : index
    %512 = memref.load %arg3[%c109] : memref<144xf32, #tpu.memory_space<smem>>
    %513 = vector.broadcast %512 : f32 to vector<1x256xf32>
    %514 = arith.mulf %499, %513 : vector<1x256xf32>
    %515 = arith.addf %496, %514 : vector<1x256xf32>
    %c241_i32_48 = arith.constant 241 : i32
    %516 = tpu.dynamic_rotate %6 by %c241_i32_48 dim 1 : vector<1x256xf32>, i32 -> vector<1x256xf32>
    %cst_49 = arith.constant 0.000000e+00 : f32
    %517 = vector.broadcast %cst_49 : f32 to vector<1x256xf32>
    %518 = arith.select %477, %516, %517 : vector<1x256xi1>, vector<1x256xf32>
    %c98 = arith.constant 98 : index
    %519 = memref.load %arg3[%c98] : memref<144xf32, #tpu.memory_space<smem>>
    %520 = vector.broadcast %519 : f32 to vector<1x256xf32>
    %521 = arith.mulf %518, %520 : vector<1x256xf32>
    %522 = arith.addf %503, %521 : vector<1x256xf32>
    %c102 = arith.constant 102 : index
    %523 = memref.load %arg3[%c102] : memref<144xf32, #tpu.memory_space<smem>>
    %524 = vector.broadcast %523 : f32 to vector<1x256xf32>
    %525 = arith.mulf %518, %524 : vector<1x256xf32>
    %526 = arith.addf %507, %525 : vector<1x256xf32>
    %c106 = arith.constant 106 : index
    %527 = memref.load %arg3[%c106] : memref<144xf32, #tpu.memory_space<smem>>
    %528 = vector.broadcast %527 : f32 to vector<1x256xf32>
    %529 = arith.mulf %518, %528 : vector<1x256xf32>
    %530 = arith.addf %511, %529 : vector<1x256xf32>
    %c110 = arith.constant 110 : index
    %531 = memref.load %arg3[%c110] : memref<144xf32, #tpu.memory_space<smem>>
    %532 = vector.broadcast %531 : f32 to vector<1x256xf32>
    %533 = arith.mulf %518, %532 : vector<1x256xf32>
    %534 = arith.addf %515, %533 : vector<1x256xf32>
    %c241_i32_50 = arith.constant 241 : i32
    %535 = tpu.dynamic_rotate %8 by %c241_i32_50 dim 1 : vector<1x256xf32>, i32 -> vector<1x256xf32>
    %cst_51 = arith.constant 0.000000e+00 : f32
    %536 = vector.broadcast %cst_51 : f32 to vector<1x256xf32>
    %537 = arith.select %477, %535, %536 : vector<1x256xi1>, vector<1x256xf32>
    %c99 = arith.constant 99 : index
    %538 = memref.load %arg3[%c99] : memref<144xf32, #tpu.memory_space<smem>>
    %539 = vector.broadcast %538 : f32 to vector<1x256xf32>
    %540 = arith.mulf %537, %539 : vector<1x256xf32>
    %541 = arith.addf %522, %540 : vector<1x256xf32>
    %c103 = arith.constant 103 : index
    %542 = memref.load %arg3[%c103] : memref<144xf32, #tpu.memory_space<smem>>
    %543 = vector.broadcast %542 : f32 to vector<1x256xf32>
    %544 = arith.mulf %537, %543 : vector<1x256xf32>
    %545 = arith.addf %526, %544 : vector<1x256xf32>
    %c107 = arith.constant 107 : index
    %546 = memref.load %arg3[%c107] : memref<144xf32, #tpu.memory_space<smem>>
    %547 = vector.broadcast %546 : f32 to vector<1x256xf32>
    %548 = arith.mulf %537, %547 : vector<1x256xf32>
    %549 = arith.addf %530, %548 : vector<1x256xf32>
    %c111 = arith.constant 111 : index
    %550 = memref.load %arg3[%c111] : memref<144xf32, #tpu.memory_space<smem>>
    %551 = vector.broadcast %550 : f32 to vector<1x256xf32>
    %552 = arith.mulf %537, %551 : vector<1x256xf32>
    %553 = arith.addf %534, %552 : vector<1x256xf32>
    %c240_i32_52 = arith.constant 240 : i32
    %554 = tpu.dynamic_rotate %2 by %c240_i32_52 dim 1 : vector<1x256xf32>, i32 -> vector<1x256xf32>
    %cst_53 = arith.constant 0.000000e+00 : f32
    %555 = vector.broadcast %cst_53 : f32 to vector<1x256xf32>
    %556 = arith.select %18, %554, %555 : vector<1x256xi1>, vector<1x256xf32>
    %c112 = arith.constant 112 : index
    %557 = memref.load %arg3[%c112] : memref<144xf32, #tpu.memory_space<smem>>
    %558 = vector.broadcast %557 : f32 to vector<1x256xf32>
    %559 = arith.mulf %556, %558 : vector<1x256xf32>
    %560 = arith.addf %541, %559 : vector<1x256xf32>
    %c116 = arith.constant 116 : index
    %561 = memref.load %arg3[%c116] : memref<144xf32, #tpu.memory_space<smem>>
    %562 = vector.broadcast %561 : f32 to vector<1x256xf32>
    %563 = arith.mulf %556, %562 : vector<1x256xf32>
    %564 = arith.addf %545, %563 : vector<1x256xf32>
    %c120 = arith.constant 120 : index
    %565 = memref.load %arg3[%c120] : memref<144xf32, #tpu.memory_space<smem>>
    %566 = vector.broadcast %565 : f32 to vector<1x256xf32>
    %567 = arith.mulf %556, %566 : vector<1x256xf32>
    %568 = arith.addf %549, %567 : vector<1x256xf32>
    %c124 = arith.constant 124 : index
    %569 = memref.load %arg3[%c124] : memref<144xf32, #tpu.memory_space<smem>>
    %570 = vector.broadcast %569 : f32 to vector<1x256xf32>
    %571 = arith.mulf %556, %570 : vector<1x256xf32>
    %572 = arith.addf %553, %571 : vector<1x256xf32>
    %c240_i32_54 = arith.constant 240 : i32
    %573 = tpu.dynamic_rotate %4 by %c240_i32_54 dim 1 : vector<1x256xf32>, i32 -> vector<1x256xf32>
    %cst_55 = arith.constant 0.000000e+00 : f32
    %574 = vector.broadcast %cst_55 : f32 to vector<1x256xf32>
    %575 = arith.select %18, %573, %574 : vector<1x256xi1>, vector<1x256xf32>
    %c113 = arith.constant 113 : index
    %576 = memref.load %arg3[%c113] : memref<144xf32, #tpu.memory_space<smem>>
    %577 = vector.broadcast %576 : f32 to vector<1x256xf32>
    %578 = arith.mulf %575, %577 : vector<1x256xf32>
    %579 = arith.addf %560, %578 : vector<1x256xf32>
    %c117 = arith.constant 117 : index
    %580 = memref.load %arg3[%c117] : memref<144xf32, #tpu.memory_space<smem>>
    %581 = vector.broadcast %580 : f32 to vector<1x256xf32>
    %582 = arith.mulf %575, %581 : vector<1x256xf32>
    %583 = arith.addf %564, %582 : vector<1x256xf32>
    %c121 = arith.constant 121 : index
    %584 = memref.load %arg3[%c121] : memref<144xf32, #tpu.memory_space<smem>>
    %585 = vector.broadcast %584 : f32 to vector<1x256xf32>
    %586 = arith.mulf %575, %585 : vector<1x256xf32>
    %587 = arith.addf %568, %586 : vector<1x256xf32>
    %c125 = arith.constant 125 : index
    %588 = memref.load %arg3[%c125] : memref<144xf32, #tpu.memory_space<smem>>
    %589 = vector.broadcast %588 : f32 to vector<1x256xf32>
    %590 = arith.mulf %575, %589 : vector<1x256xf32>
    %591 = arith.addf %572, %590 : vector<1x256xf32>
    %c240_i32_56 = arith.constant 240 : i32
    %592 = tpu.dynamic_rotate %6 by %c240_i32_56 dim 1 : vector<1x256xf32>, i32 -> vector<1x256xf32>
    %cst_57 = arith.constant 0.000000e+00 : f32
    %593 = vector.broadcast %cst_57 : f32 to vector<1x256xf32>
    %594 = arith.select %18, %592, %593 : vector<1x256xi1>, vector<1x256xf32>
    %c114 = arith.constant 114 : index
    %595 = memref.load %arg3[%c114] : memref<144xf32, #tpu.memory_space<smem>>
    %596 = vector.broadcast %595 : f32 to vector<1x256xf32>
    %597 = arith.mulf %594, %596 : vector<1x256xf32>
    %598 = arith.addf %579, %597 : vector<1x256xf32>
    %c118 = arith.constant 118 : index
    %599 = memref.load %arg3[%c118] : memref<144xf32, #tpu.memory_space<smem>>
    %600 = vector.broadcast %599 : f32 to vector<1x256xf32>
    %601 = arith.mulf %594, %600 : vector<1x256xf32>
    %602 = arith.addf %583, %601 : vector<1x256xf32>
    %c122 = arith.constant 122 : index
    %603 = memref.load %arg3[%c122] : memref<144xf32, #tpu.memory_space<smem>>
    %604 = vector.broadcast %603 : f32 to vector<1x256xf32>
    %605 = arith.mulf %594, %604 : vector<1x256xf32>
    %606 = arith.addf %587, %605 : vector<1x256xf32>
    %c126 = arith.constant 126 : index
    %607 = memref.load %arg3[%c126] : memref<144xf32, #tpu.memory_space<smem>>
    %608 = vector.broadcast %607 : f32 to vector<1x256xf32>
    %609 = arith.mulf %594, %608 : vector<1x256xf32>
    %610 = arith.addf %591, %609 : vector<1x256xf32>
    %c240_i32_58 = arith.constant 240 : i32
    %611 = tpu.dynamic_rotate %8 by %c240_i32_58 dim 1 : vector<1x256xf32>, i32 -> vector<1x256xf32>
    %cst_59 = arith.constant 0.000000e+00 : f32
    %612 = vector.broadcast %cst_59 : f32 to vector<1x256xf32>
    %613 = arith.select %18, %611, %612 : vector<1x256xi1>, vector<1x256xf32>
    %c115 = arith.constant 115 : index
    %614 = memref.load %arg3[%c115] : memref<144xf32, #tpu.memory_space<smem>>
    %615 = vector.broadcast %614 : f32 to vector<1x256xf32>
    %616 = arith.mulf %613, %615 : vector<1x256xf32>
    %617 = arith.addf %598, %616 : vector<1x256xf32>
    %c119 = arith.constant 119 : index
    %618 = memref.load %arg3[%c119] : memref<144xf32, #tpu.memory_space<smem>>
    %619 = vector.broadcast %618 : f32 to vector<1x256xf32>
    %620 = arith.mulf %613, %619 : vector<1x256xf32>
    %621 = arith.addf %602, %620 : vector<1x256xf32>
    %c123 = arith.constant 123 : index
    %622 = memref.load %arg3[%c123] : memref<144xf32, #tpu.memory_space<smem>>
    %623 = vector.broadcast %622 : f32 to vector<1x256xf32>
    %624 = arith.mulf %613, %623 : vector<1x256xf32>
    %625 = arith.addf %606, %624 : vector<1x256xf32>
    %c127 = arith.constant 127 : index
    %626 = memref.load %arg3[%c127] : memref<144xf32, #tpu.memory_space<smem>>
    %627 = vector.broadcast %626 : f32 to vector<1x256xf32>
    %628 = arith.mulf %613, %627 : vector<1x256xf32>
    %629 = arith.addf %610, %628 : vector<1x256xf32>
    %630 = arith.andi %14, %18 : vector<1x256xi1>
    %c239_i32 = arith.constant 239 : i32
    %631 = tpu.dynamic_rotate %2 by %c239_i32 dim 1 : vector<1x256xf32>, i32 -> vector<1x256xf32>
    %cst_60 = arith.constant 0.000000e+00 : f32
    %632 = vector.broadcast %cst_60 : f32 to vector<1x256xf32>
    %633 = arith.select %630, %631, %632 : vector<1x256xi1>, vector<1x256xf32>
    %c128 = arith.constant 128 : index
    %634 = memref.load %arg3[%c128] : memref<144xf32, #tpu.memory_space<smem>>
    %635 = vector.broadcast %634 : f32 to vector<1x256xf32>
    %636 = arith.mulf %633, %635 : vector<1x256xf32>
    %637 = arith.addf %617, %636 : vector<1x256xf32>
    %c132 = arith.constant 132 : index
    %638 = memref.load %arg3[%c132] : memref<144xf32, #tpu.memory_space<smem>>
    %639 = vector.broadcast %638 : f32 to vector<1x256xf32>
    %640 = arith.mulf %633, %639 : vector<1x256xf32>
    %641 = arith.addf %621, %640 : vector<1x256xf32>
    %c136 = arith.constant 136 : index
    %642 = memref.load %arg3[%c136] : memref<144xf32, #tpu.memory_space<smem>>
    %643 = vector.broadcast %642 : f32 to vector<1x256xf32>
    %644 = arith.mulf %633, %643 : vector<1x256xf32>
    %645 = arith.addf %625, %644 : vector<1x256xf32>
    %c140 = arith.constant 140 : index
    %646 = memref.load %arg3[%c140] : memref<144xf32, #tpu.memory_space<smem>>
    %647 = vector.broadcast %646 : f32 to vector<1x256xf32>
    %648 = arith.mulf %633, %647 : vector<1x256xf32>
    %649 = arith.addf %629, %648 : vector<1x256xf32>
    %c239_i32_61 = arith.constant 239 : i32
    %650 = tpu.dynamic_rotate %4 by %c239_i32_61 dim 1 : vector<1x256xf32>, i32 -> vector<1x256xf32>
    %cst_62 = arith.constant 0.000000e+00 : f32
    %651 = vector.broadcast %cst_62 : f32 to vector<1x256xf32>
    %652 = arith.select %630, %650, %651 : vector<1x256xi1>, vector<1x256xf32>
    %c129 = arith.constant 129 : index
    %653 = memref.load %arg3[%c129] : memref<144xf32, #tpu.memory_space<smem>>
    %654 = vector.broadcast %653 : f32 to vector<1x256xf32>
    %655 = arith.mulf %652, %654 : vector<1x256xf32>
    %656 = arith.addf %637, %655 : vector<1x256xf32>
    %c133 = arith.constant 133 : index
    %657 = memref.load %arg3[%c133] : memref<144xf32, #tpu.memory_space<smem>>
    %658 = vector.broadcast %657 : f32 to vector<1x256xf32>
    %659 = arith.mulf %652, %658 : vector<1x256xf32>
    %660 = arith.addf %641, %659 : vector<1x256xf32>
    %c137 = arith.constant 137 : index
    %661 = memref.load %arg3[%c137] : memref<144xf32, #tpu.memory_space<smem>>
    %662 = vector.broadcast %661 : f32 to vector<1x256xf32>
    %663 = arith.mulf %652, %662 : vector<1x256xf32>
    %664 = arith.addf %645, %663 : vector<1x256xf32>
    %c141 = arith.constant 141 : index
    %665 = memref.load %arg3[%c141] : memref<144xf32, #tpu.memory_space<smem>>
    %666 = vector.broadcast %665 : f32 to vector<1x256xf32>
    %667 = arith.mulf %652, %666 : vector<1x256xf32>
    %668 = arith.addf %649, %667 : vector<1x256xf32>
    %c239_i32_63 = arith.constant 239 : i32
    %669 = tpu.dynamic_rotate %6 by %c239_i32_63 dim 1 : vector<1x256xf32>, i32 -> vector<1x256xf32>
    %cst_64 = arith.constant 0.000000e+00 : f32
    %670 = vector.broadcast %cst_64 : f32 to vector<1x256xf32>
    %671 = arith.select %630, %669, %670 : vector<1x256xi1>, vector<1x256xf32>
    %c130 = arith.constant 130 : index
    %672 = memref.load %arg3[%c130] : memref<144xf32, #tpu.memory_space<smem>>
    %673 = vector.broadcast %672 : f32 to vector<1x256xf32>
    %674 = arith.mulf %671, %673 : vector<1x256xf32>
    %675 = arith.addf %656, %674 : vector<1x256xf32>
    %c134 = arith.constant 134 : index
    %676 = memref.load %arg3[%c134] : memref<144xf32, #tpu.memory_space<smem>>
    %677 = vector.broadcast %676 : f32 to vector<1x256xf32>
    %678 = arith.mulf %671, %677 : vector<1x256xf32>
    %679 = arith.addf %660, %678 : vector<1x256xf32>
    %c138 = arith.constant 138 : index
    %680 = memref.load %arg3[%c138] : memref<144xf32, #tpu.memory_space<smem>>
    %681 = vector.broadcast %680 : f32 to vector<1x256xf32>
    %682 = arith.mulf %671, %681 : vector<1x256xf32>
    %683 = arith.addf %664, %682 : vector<1x256xf32>
    %c142 = arith.constant 142 : index
    %684 = memref.load %arg3[%c142] : memref<144xf32, #tpu.memory_space<smem>>
    %685 = vector.broadcast %684 : f32 to vector<1x256xf32>
    %686 = arith.mulf %671, %685 : vector<1x256xf32>
    %687 = arith.addf %668, %686 : vector<1x256xf32>
    %c239_i32_65 = arith.constant 239 : i32
    %688 = tpu.dynamic_rotate %8 by %c239_i32_65 dim 1 : vector<1x256xf32>, i32 -> vector<1x256xf32>
    %cst_66 = arith.constant 0.000000e+00 : f32
    %689 = vector.broadcast %cst_66 : f32 to vector<1x256xf32>
    %690 = arith.select %630, %688, %689 : vector<1x256xi1>, vector<1x256xf32>
    %c131 = arith.constant 131 : index
    %691 = memref.load %arg3[%c131] : memref<144xf32, #tpu.memory_space<smem>>
    %692 = vector.broadcast %691 : f32 to vector<1x256xf32>
    %693 = arith.mulf %690, %692 : vector<1x256xf32>
    %694 = arith.addf %675, %693 : vector<1x256xf32>
    %c135 = arith.constant 135 : index
    %695 = memref.load %arg3[%c135] : memref<144xf32, #tpu.memory_space<smem>>
    %696 = vector.broadcast %695 : f32 to vector<1x256xf32>
    %697 = arith.mulf %690, %696 : vector<1x256xf32>
    %698 = arith.addf %679, %697 : vector<1x256xf32>
    %c139 = arith.constant 139 : index
    %699 = memref.load %arg3[%c139] : memref<144xf32, #tpu.memory_space<smem>>
    %700 = vector.broadcast %699 : f32 to vector<1x256xf32>
    %701 = arith.mulf %690, %700 : vector<1x256xf32>
    %702 = arith.addf %683, %701 : vector<1x256xf32>
    %c143 = arith.constant 143 : index
    %703 = memref.load %arg3[%c143] : memref<144xf32, #tpu.memory_space<smem>>
    %704 = vector.broadcast %703 : f32 to vector<1x256xf32>
    %705 = arith.mulf %690, %704 : vector<1x256xf32>
    %706 = arith.addf %687, %705 : vector<1x256xf32>
    %707 = vector.shape_cast %694 : vector<1x256xf32> to vector<1x1x256xf32>
    %708 = vector.shape_cast %698 : vector<1x256xf32> to vector<1x1x256xf32>
    %709 = vector.shape_cast %702 : vector<1x256xf32> to vector<1x1x256xf32>
    %710 = vector.shape_cast %706 : vector<1x256xf32> to vector<1x1x256xf32>
    %711 = tpu.concatenate %707, %708, %709, %710 in 1 : vector<1x1x256xf32>, vector<1x1x256xf32>, vector<1x1x256xf32>, vector<1x1x256xf32> -> vector<1x4x256xf32>
    %c0_67 = arith.constant 0 : index
    %c0_68 = arith.constant 0 : index
    %c0_69 = arith.constant 0 : index
    %712 = vector.load %arg5[%c0_67, %c0_68, %c0_69] : memref<1x4x256xf32, #tpu.memory_space<vmem>>, vector<1x4x256xf32>
    tpu.vector_store %arg5[%c0_67, %c0_68, %c0_69], %711 {strides = array<i32>} : memref<1x4x256xf32, #tpu.memory_space<vmem>>, vector<1x4x256xf32>,
    return
  }
  func.func @transform_0(%arg0: i32) -> (i32, i32, i32) {
    %c0_i32 = arith.constant 0 : i32
    %c0_i32_0 = arith.constant 0 : i32
    %c0_i32_1 = arith.constant 0 : i32
    return %arg0, %c0_i32, %c0_i32_0 : i32, i32, i32
  }
  func.func @transform_1(%arg0: i32) -> (i32, i32) {
    %c0_i32 = arith.constant 0 : i32
    %c0_i32_0 = arith.constant 0 : i32
    %c0_i32_1 = arith.constant 0 : i32
    return %c0_i32, %c0_i32_0 : i32, i32
  }
  func.func @transform_2(%arg0: i32) -> i32 {
    %c0_i32 = arith.constant 0 : i32
    %c0_i32_0 = arith.constant 0 : i32
    return %c0_i32 : i32
  }
  func.func @transform_3(%arg0: i32) -> i32 {
    %c0_i32 = arith.constant 0 : i32
    %c0_i32_0 = arith.constant 0 : i32
    return %c0_i32 : i32
  }
  func.func @transform_4(%arg0: i32) -> (i32, i32, i32) {
    %c0_i32 = arith.constant 0 : i32
    %c0_i32_0 = arith.constant 0 : i32
    %c0_i32_1 = arith.constant 0 : i32
    return %arg0, %c0_i32, %c0_i32_0 : i32, i32, i32
  }
}

</mosaic_0001>

<bundles_post_ra>
// kernel: tpu_custom_call.1
= control target key start
LH: loop header
LB: loop body
LE: loop exit
PB: predicated region body
PF: predicated region fallthrough
CT: control target
= control target key end

     0   :  { %s4078_s0 = inlined_call_operand.hbm [shape: f32[2,4,256], index: 0, kind: input, shape index: {}]   ;;  %s4079_s1 = inlined_call_operand.hbm [shape: s32[1,256], index: 1, kind: input, shape index: {}]   ;;  %s4080_s2 = inlined_call_operand.hbm [shape: f32[144], index: 2, kind: input, shape index: {}]   ;;  %s4081_s3 = inlined_call_operand.vmem [shape: f32[4], index: 3, kind: input, shape index: {}]   ;;  %s4082_s4 = inlined_call_operand.hbm [shape: f32[2,4,256], index: 4, kind: output, shape index: {}]  }
   0x1   :  { %4094 = sst [smem:[#allocation24_spill]] %s4078_s0 }
   0x2   :  { %4095 = sst [smem:[#allocation25_spill]] %s4079_s1 }
   0x3   :  { %4096 = sst [smem:[#allocation26_spill]] %s4080_s2 }
   0x4   :  { %4097 = sst [smem:[#allocation27_spill]] %s4081_s3 }
   0x5   :  { %9 = vsyncpa [#allocation3], 0 }
   0x6   :  { %11 = vsyncpa [#allocation3 + $0x1], 0 }
   0x7   :  { %12 = vsyncpa [#allocation8], 0 }
   0x8   :  { %13 = vsyncpa [#allocation5], 0 }
   0x9   :  { %14 = vsyncpa [#allocation6], 0 }
   0xa   :  { %15 = vsyncpa [#allocation4], 0 }
   0xb   :  { %17 = vsyncpa [#allocation4 + $0x1], 0  ;;  %s2711_s15 = smov 0   ;;  %s2713_s16 = smov 0  }
   0xc   :  { %s2715_s17 = smov 0   ;;  %s2717_s18 = smov 0  }
   0xd LB: > { %4098 = sst [smem:[#allocation17_spill]] %s2658_s15  ;;  %s2732_s19 = sadd.s32 4294967295, %s2670_s18   ;;  %s2670_s18 = sphi %s2717_s18, %s4129_s18   ;;  %s2666_s17 = sphi %s2715_s17, %s4132_s17   ;;  %s2662_s16 = sphi %s2713_s16, %s4131_s16   ;;  %s2658_s15 = sphi %s2711_s15, %s4130_s15  }
   0xe   : > { %4099 = sst [smem:[#allocation18_spill]] %s2662_s16  ;;  %s2239_s20 = sadd.s32 4294967294, %s2670_s18  }
   0xf   : > { %4100 = sst [smem:[#allocation19_spill]] %s2666_s17  ;;  %p43_p0 = scmp.ne.s32.totalorder %s2662_s16, %s2658_s15 }
  0x10   : > { %4101 = sst [smem:[#allocation20_spill]] %s2670_s18  ;;  %p44_p1 = scmp.eq.s32.totalorder %s2732_s19, 0 }
  0x11   : > { %p130_p2 = scmp.eq.s32.totalorder %s2732_s19, 1  ;;  %p136_p3 = scmp.eq.s32.totalorder %s2239_s20, 1 }
  0x12   : > { %p2741_p4 = por %p44_p1, %p43_p0  ;;  %p2240_p5 = scmp.ge.s32.totalorder %s2670_s18, 1 }
  0x13   : > { %p2746_p6 = por %p136_p3, %p43_p0  ;;  %p143_p7 = scmp.lt.s32.totalorder %s2670_s18, 3 }
  0x14   : > { %s4105_s1 = sld [smem:[#allocation25_spill]]  ;;  %s2672_s27 = smov [#allocation7]  }
  0x15   : > { %s4103_s22 = scalar_select %p2746_p6, 1, 0 }
  0x16   : > { %p2754_p8 = pnand %p2240_p5, %p143_p7  ;;  %s157_s28 = sshll.u32 %s2672_s27, 4  ;;  %s158_s28 = int_to_ptr.vmem [resolvable:$true] %s157_s28 }
  0x17   : > { %4104 = sst [smem:[#allocation21_spill]] %s4103_s22  ;;  %s2673_s9 = smov [#allocation9]  }
  0x18   : > { %p2429_p10 = pneg %p2754_p8  ;;  %s4107_s2 = sld [smem:[#allocation26_spill]] }
  0x19   : > { %s4108_s3 = sld [smem:[#allocation27_spill]]  ;;  %s2674_s10 = smov [#allocation10]  }
  0x1a   : > { %s155_s25 = sshll.u32 %s4105_s1, 4  ;;  %p2430_p11 = pnand %p2429_p10, %p44_p1  ;;  %s156_s25 = int_to_ptr.hbm [resolvable:$true] %s155_s25 }
  0x1b   : > { %s2770_s11 = sadd.s32 1, %s2670_s18   ;;  %s30_s13 = sadd.s32 1, %s2666_s17 }
  0x1c   : > { %2432 = dma.hbm_to_vmem [thread:$0]  (!%p2430_p11), %s156_s25, 32, %s158_s28, [#allocation8]  }
  0x1d   : > { %4109 = sst [smem:[#allocation22_spill]] %s2770_s11  ;;  %s27_s12 = ssub.s32 %s2670_s18, %s2770_s11 }
  0x1e   : > { %s167_s5 = sshll.u32 %s4107_s2, 4  ;;  %p28_p12 = scmp.eq.s32.totalorder %s27_s12, 0  ;;  %s168_s5 = int_to_ptr.hbm [resolvable:$true] %s167_s5 }
  0x1f   : > { %s177_s8 = sshll.u32 %s4108_s3, 4  ;;  %p37_p13 = scmp.ne.s32.totalorder %s2666_s17, %s2662_s16  ;;  %s178_s8 = int_to_ptr.vmem [resolvable:$true] %s177_s8 }
  0x20   : > { %2435 = dma.hbm_to_smem (!%p2430_p11), %s168_s5, 32, %s2673_s9, [#allocation5]  }
  0x21   : > { %2438 = dma.vmem_to_smem (!%p2430_p11), %s178_s8, 16, %s2674_s10, [#allocation6]  }
  0x22   : > { %p38_p0 = scmp.eq.s32.totalorder %s2670_s18, 0  ;;  %p2783_p3 = por %p130_p2, %p37_p13 }
  0x23   : > { %s2779_s14 = scalar_select %p28_p12, %s2666_s17, %s30_s13  }
  0x24   : > { %p2450_p5 = scmp.lt.s32.totalorder %s2670_s18, 2  ;;  %s188_s23 = sand.u32 1, %s2666_s17  }
  0x25   : > { %4110 = sst [smem:[#allocation23_spill]] %s2779_s14  ;;  %s2411_s24 = sshll.u32 %s2670_s18, 3 }
  0x26   : > { %p39_p7 = por %p38_p0, %p37_p13  ;;  %s2245_s25 = sshll.u32 %s188_s23, 3 }
  0x27   : > { %s4112_s0 = sld [smem:[#allocation24_spill]]  ;;  %s192_s5 = scalar_lea.vmem [#allocation2], %s2245_s25 }
  0x28   : > { %s201_s6 = sshll.u32 %s192_s5, 4  ;;  %p2793_p10 = pnand %p2450_p5, %p39_p7  ;;  %s202_s6 = int_to_ptr.vmem [resolvable:$true] %s201_s6 }
  0x29   : > { %s189_s8 = scalar_lea.sflag [#allocation3], %s188_s23 }
  0x2a   : > { %p2566_p11 = pneg %p2793_p10 }
  0x2d   : > { %s197_s29 = scalar_lea.hbm %s4112_s0, %s2411_s24  ;;  %s2569_s24 = scalar_lea.hbm %s4112_s0, 16 }
  0x2e   : > { %s199_s30 = sshll.u32 %s197_s29, 4  ;;  %s200_s30 = int_to_ptr.hbm [resolvable:$true] %s199_s30 }
  0x2f   : > { %s2562_s9 = sshra.s32 %s200_s30, 4  ;;  %s2563_s9 = int_to_ptr.hbm [resolvable:$true] %s2562_s9 }
  0x30   : > { %s2564_s10 = scalar_lea.hbm %s2563_s9, 8  ;;  %p2570_p0 = scmp.lt.s32.totalorder %s2563_s9, %s4112_s0 }
  0x31   : > { %p2565_p2 = scmp.ne.s32.totalorder %s2563_s9, %s2564_s10  ;;  %p2571_p5 = scmp.lt.s32.totalorder %s2569_s24, %s2564_s10 }
  0x33   : > { %p2567_p12 = pnand %p2566_p11, %p2565_p2  ;;  %p2572_p7 = por %p2571_p5, %p2570_p0 }
  0x35   : > { %p2568_p13 = pneg %p2567_p12 }
  0x37   : > { %p2573_p9 = pnand %p2572_p7, %p2568_p13 }
  0x39   : > { %2576 = shalt.err (!%p2573_p9)
}
  0x3a   : > { %2442 = dma.hbm_to_vmem [thread:$0]  (!%p2793_p10), %s200_s30, 128, %s202_s6, %s189_s8  }
  0x3b   : > { %210 = sbr.rel (%p2754_p8) target bundleno = 410 (0x19a), region = 36  ;;  %s2810_s23 = sand.u32 (!%p2754_p8), 1, %s2662_s16  }
  0x3c   : > { %s4083_s28 = sshll.u32 (!%p2754_p8), %s2810_s23, 3  ;;  %s213_s29 = scalar_lea.sflag (!%p2754_p8), [#allocation3], %s2810_s23 }
  0x3d   : > { %s2816_s5 = scalar_lea.vmem (!%p2754_p8), [#allocation2], %s4083_s28 }
  0x40   : > { %2637 = dma.done.wait (%p2741_p4), %s213_s29, 128  }
  0x41   : > { %2639 = vsyncadd (%p2741_p4), %s213_s29, 4294967168 }
  0x42   : > { %2641 = dma.done.wait (%p44_p1), [#allocation8], 32  }
  0x43   : > { %2643 = vsyncadd (%p44_p1), [#allocation8], 4294967264 }
  0x44   : > { %2645 = dma.done.wait (%p44_p1), [#allocation5], 32  }
  0x45   : > { %2647 = vsyncadd (%p44_p1), [#allocation5], 4294967264 }
  0x46   : > { %2649 = dma.done.wait (%p44_p1), [#allocation6], 16  }
  0x47   : > { %2651 = vsyncadd (%p44_p1), [#allocation6], 4294967280 }
  0x48   : > { %237 = sfence }
  0x49   : > { %v2835_v0 = vld [vmem:[%s2816_s5] sm:$0xff]  ;;  %s2675_s21 = smov 17   ;;  %s2676_s26 = smov 16   ;;  %v260_v9 = vlaneseq  ;;  %v2680_v16 = vmov 1   ;;  %vm284_vm2 = vcmask 1040384   ;;  %v4093_v18 = vmov 0  }
  0x4a   : > { %v2838_v1 = vperm.slane %v2835_v0, 1  ;;  %v2841_v2 = vperm.slane %v2835_v0, 0  ;;  %v2844_v3 = vperm.slane %v2835_v0, 2  ;;  %v2850_v4 = vperm.slane %v2835_v0, 5  ;;  %s2677_s30 = smov 15   ;;  %s2678_s6 = smov 1  }
  0x4b   : > { %v2853_v5 = vperm.slane %v2835_v0, 4  ;;  %v2856_v6 = vperm.slane %v2835_v0, 6  ;;  %v2862_v7 = vperm.slane %v2835_v0, 7  ;;  %v2865_v8 = vperm.slane %v2835_v0, 3  ;;  %s2679_s7 = smov 127   ;;  %s2901_s8 = sld [smem:[#allocation9 + $0x2]] }
  0x4c   : > { %350 = vrot.lane.b32.xlu1 %v2838_v1, %s2675_s21  ;;  %293 = vrot.lane.b32.xlu0 %v2841_v2, %s2675_s21  ;;  %v2903_v11 = vand.u32 127, %v260_v9  ;;  %s2905_s9 = sld [smem:[#allocation9 + $0x6]]  ;;  %v283_v17 = vrot.slane %v2680_v16, 7  ;;  %v2953_v21 = vld [vmem:[#allocation7] sm:$0x3]  ;;  %s4114_s17 = smov 113  }
  0x4d   : > { %406 = vrot.lane.b32.xlu2 %v2844_v3, %s2675_s21  ;;  %s2907_s10 = sld [smem:[#allocation9 + $0xa]]  ;;  %vm263_vm3 = vcmp.ge.s32.totalorder %v2953_v21, 1  ;;  %v2683_v24 = vmov 286326784   ;;  %vm530_vm7 = vcmask 1043456   ;;  %vm264_vm9 = vcmp.le.s32.totalorder %v2953_v21, 14 }
  0x4e   : > { %s2909_s12 = sld [smem:[#allocation9 + $0xe]]  ;;  %vm297_vm0 = vcmp.lt.s32.totalorder %v2903_v11, 17  ;;  %vm265_vm1 = vcmp.ge.s32.totalorder %v2903_v11, 16  ;;  %v311_v25 = vunpack.c.l.s4 %v2683_v24  ;;  %vm518_vm6 = vcmp.lt.s32.totalorder %v2903_v11, 16 }
  0x4f   : > { %s2915_s13 = sld [smem:[#allocation9 + $0x1]]  ;;  %v281_v19 = vsel %vm265_vm1, 1, %v4093_v18  ;;  %vm725_vm8 = vcmp.lt.s32.totalorder %v2903_v11, 15  ;;  %vm934_vm11 = vcmp.lt.s32.totalorder %v2903_v11, 1  ;;  %vm1249_vm12 = vcmp.lt.s32.totalorder %v2903_v11, 127 }
  0x50   : > { %s2918_s24 = sld [smem:[#allocation9 + $0x5]]  ;;  %v2956_v22 = vsel %vm284_vm2, %v281_v19, %v283_v17  ;;  %v2999_v32 = vunpack.c.0.s8 %v311_v25  ;;  %vm1464_vm14 = vcmp.lt.s32.totalorder %v2903_v11, 113 }
  0x51   : > { %s2922_s25 = sld [smem:[#allocation9 + $0x9]]  ;;  %vm286_vm4 = vcmp.ne.s32.totalorder %v2956_v22, 0  ;;  %v419_v28 = vstv %s2901_s8 }
  0x52   : > { %s2924_s27 = sld [smem:[#allocation9 + $0xd]]  ;;  %vm2980_vm5 = vmand %vm263_vm3, %vm286_vm4  ;;  %v429_v29 = vstv %s2905_s9 }
  0x53   : > { %s2931_s29 = sld [smem:[#allocation10]]  ;;  %v439_v30 = vstv %s2907_s10  ;;  %vm3283_vm10 = vmand %vm264_vm9, %vm286_vm4 }
  0x54   : > { %352 = vrot.lane.b32.xlu1 %v2850_v4, %s2675_s21  ;;  %295 = vrot.lane.b32.xlu0 %v2853_v5, %s2675_s21  ;;  %s2947_s28 = sld [smem:[#allocation9]]  ;;  %v449_v33 = vstv %s2909_s12 }
  0x55   : > { %408 = vrot.lane.b32.xlu2 %v2856_v6, %s2675_s21  ;;  %s2949_s0 = sld [smem:[#allocation9 + $0x4]]  ;;  %v363_v34 = vstv %s2915_s13 }
  0x56   : > { %s2958_s1 = sld [smem:[#allocation9 + $0x8]]  ;;  %v373_v36 = vstv %s2918_s24 }
  0x57   : > { %s2960_s2 = sld [smem:[#allocation9 + $0xc]]  ;;  %v383_v37 = vstv %s2922_s25 }
  0x58   : > { %s2962_s3 = sld [smem:[#allocation9 + $0x3]]  ;;  %v393_v38 = vstv %s2924_s27  ;;  %s2684_s27 = smov 112  }
  0x59   : > { %s2970_s14 = sld [smem:[#allocation9 + $0xf]]  ;;  %v270_v35 = vstv %s2931_s29 }
  0x5a   : > { %s2984_s16 = sld [smem:[#allocation9 + $0x11]]  ;;  %v307_v44 = vstv %s2947_s28  ;;  %v3024_v47 = vadd.f32 %v270_v35, %v2835_v0 }
  0x5b   : > { %s2988_s11 = sld [smem:[#allocation9 + $0x15]]  ;;  %v317_v45 = vstv %s2949_s0 }
  0x5c   : > { %464 = vrot.lane.b32.xlu1 %v2862_v7, %s2675_s21  ;;  %462 = vrot.lane.b32.xlu0 %v2865_v8, %s2675_s21  ;;  %s2933_s21 = sld [smem:[#allocation10 + $0x1]]  ;;  %v327_v46 = vstv %s2958_s1 }
  0x5d   : > { %514 = vrot.lane.b32.xlu2 %v2841_v2, %s2676_s26  ;;  %s2990_s18 = sld [smem:[#allocation9 + $0x10]]  ;;  %v337_v50 = vstv %s2960_s2 }
  0x5e   : > { %s2997_s22 = sld [smem:[#allocation9 + $0x14]]  ;;  %v475_v54 = vstv %s2962_s3  ;;  %s2685_s3 = smov 111  }
  0x5f   : > { %s3004_s15 = sld [smem:[#allocation9 + $0x18]]  ;;  %v505_v61 = vstv %s2970_s14 }
  0x60   : > { %s3010_s8 = sld [smem:[#allocation9 + $0x1c]] }
  0x61   : > { %s3018_s9 = sld [smem:[#allocation9 + $0x19]] }
  0x62   : > { %v273_v39 = vstv %s2933_s21  ;;  %s3026_s10 = sld [smem:[#allocation9 + $0x1d]] }
  0x63   : > { %v3038_v51 = vadd.f32 %v273_v39, %v2835_v0  ;;  %s3040_s0 = sld [smem:[#allocation9 + $0x12]]  ;;  %v524_v16 = vstv %s2990_s18 }
  0x64   : > { %567 = vrot.lane.b32.xlu1 %v2838_v1, %s2676_s26  ;;  %516 = vrot.lane.b32.xlu0 %v2853_v5, %s2676_s26  ;;  %s3052_s1 = sld [smem:[#allocation9 + $0x16]]  ;;  %v535_v17 = vstv %s2997_s22 }
  0x65   : > { %569 = vrot.lane.b32.xlu2 %v2850_v4, %s2676_s26  ;;  %s3060_s2 = sld [smem:[#allocation9 + $0x1a]]  ;;  %v546_v19 = vstv %s3004_s15 }
  0x66   : > { %s3078_s28 = sld [smem:[#allocation9 + $0x13]] }
  0x67   : > { %s3084_s12 = sld [smem:[#allocation9 + $0x20]] }
  0x68   : > { %s3090_s24 = sld [smem:[#allocation9 + $0x24]] }
  0x69   : > { %s3098_s25 = sld [smem:[#allocation9 + $0x28]] }
  0x6a   : > { %s3104_s29 = sld [smem:[#allocation9 + $0x2c]] }
  0x6b   : > { %s3109_s13 = sld [smem:[#allocation9 + $0x17]] }
  0x6c   : > { %620 = vrot.lane.b32.xlu1 %v2856_v6, %s2676_s26  ;;  %618 = vrot.lane.b32.xlu0 %v2844_v3, %s2676_s26  ;;  %s3117_s21 = sld [smem:[#allocation9 + $0x1b]] }
  0x6d   : > { %669 = vrot.lane.b32.xlu2 %v2865_v8, %s2676_s26  ;;  %s3272_s15 = sld [smem:[#allocation9 + $0x1f]] }
  0x6e   : > { %s3305_s18 = sld [smem:[#allocation9 + $0x25]] }
  0x6f   : > { %s3314_s22 = sld [smem:[#allocation9 + $0x29]] }
  0x70   : > { %s3332_s14 = sld [smem:[#allocation9 + $0x22]] }
  0x74   : > { %721 = vrot.lane.b32.xlu1 %v2841_v2, %s2677_s30  ;;  %671 = vrot.lane.b32.xlu0 %v2862_v7, %s2676_s26  ;;  %s2935_s26 = sld [smem:[#allocation10 + $0x2]] }
  0x75   : > { %723 = vrot.lane.b32.xlu2 %v2853_v5, %s2677_s30 }
  0x7a   : > { %v276_v42 = vstv %s2935_s26  ;;  %s3336_s26 = sld [smem:[#allocation9 + $0x26]] }
  0x7b   : > { %v3043_v52 = vadd.f32 %v276_v42, %v2835_v0 }
  0x7c   : > { %776 = vrot.lane.b32.xlu1 %v2850_v4, %s2677_s30  ;;  %774 = vrot.lane.b32.xlu0 %v2838_v1, %s2677_s30 }
  0x7d   : > { %826 = vrot.lane.b32.xlu2 %v2844_v3, %s2677_s30 }
  0x84   : > { %878 = vrot.lane.b32.xlu1 %v2865_v8, %s2677_s30  ;;  %828 = vrot.lane.b32.xlu0 %v2856_v6, %s2677_s30 }
  0x85   : > { %880 = vrot.lane.b32.xlu2 %v2862_v7, %s2677_s30  ;;  %s2941_s30 = sld [smem:[#allocation10 + $0x3]] }
  0x8b   : > { %v279_v43 = vstv %s2941_s30  ;;  %s3355_s30 = sld [smem:[#allocation9 + $0x2a]] }
  0x8c   : > { %932 = vrot.lane.b32.xlu1 %v2853_v5, %s2678_s6  ;;  %930 = vrot.lane.b32.xlu0 %v2841_v2, %s2678_s6  ;;  %v3046_v53 = vadd.f32 %v279_v43, %v2835_v0 }
  0x8d   : > { %983 = vrot.lane.b32.xlu2 %v2838_v1, %s2678_s6 }
  0x94   : > { %1035 = vrot.lane.b32.xlu1 %v2844_v3, %s2678_s6  ;;  %985 = vrot.lane.b32.xlu0 %v2850_v4, %s2678_s6 }
  0x95   : > { %1037 = vrot.lane.b32.xlu2 %v2856_v6, %s2678_s6 }
  0x9c   : > { %1089 = vrot.lane.b32.xlu1 %v2862_v7, %s2678_s6  ;;  %1087 = vrot.lane.b32.xlu0 %v2865_v8, %s2678_s6  ;;  %s4084_s6 = smov 113  }
  0x9d   : > { %1245 = vrot.lane.b32.xlu2 %v2841_v2, %s2679_s7 }
  0xa4   : > { %1298 = vrot.lane.b32.xlu1 %v2838_v1, %s2679_s7  ;;  %1247 = vrot.lane.b32.xlu0 %v2853_v5, %s2679_s7 }
  0xa5   : > { %1300 = vrot.lane.b32.xlu2 %v2850_v4, %s2679_s7 }
  0xa7   : > { %v407_v10 = vpop.permute.xlu2 %406 }
  0xac   : > { %1352 = vrot.lane.b32.xlu1 %v2856_v6, %s2679_s7  ;;  %1350 = vrot.lane.b32.xlu0 %v2844_v3, %s2679_s7 }
  0xad   : > { %1402 = vrot.lane.b32.xlu2 %v2865_v8, %s2679_s7 }
  0xaf   : > { %v409_v12 = vpop.permute.xlu2 %408 }
  0xb0   : > { %v410_v13 = vsel %vm297_vm0, %v407_v10, %v409_v12  ;;  %v411_v14 = vsel %vm297_vm0, %v409_v12, %v407_v10 }
  0xb1   : > { %v414_v15 = vrot.slane %v410_v13, 7 }
  0xb3   : > { %v415_v20 = vsel %vm284_vm2, %v411_v14, %v414_v15 }
  0xb4   : > { %1460 = vrot.lane.b32.xlu1 %v2841_v2, %s4084_s6  ;;  %1404 = vrot.lane.b32.xlu0 %v2862_v7, %s2679_s7  ;;  %s2966_s7 = sld [smem:[#allocation9 + $0x7]]  ;;  %v417_v31 = vsel %vm2980_vm5, %v415_v20, 0.0  ;;  %v557_v20 = vstv %s3010_s8 }
  0xb5   : > { %1462 = vrot.lane.b32.xlu2 %v2853_v5, %s4084_s6  ;;  %s2968_s6 = sld [smem:[#allocation9 + $0xb]]  ;;  %v3012_v40 = vmul.f32 %v419_v28, %v417_v31  ;;  %v3014_v41 = vmul.f32 %v429_v29, %v417_v31  ;;  %v3028_v48 = vmul.f32 %v439_v30, %v417_v31  ;;  %v3030_v49 = vmul.f32 %v449_v33, %v417_v31 }
  0xb6   : > { %v597_v30 = vstv %s3018_s9  ;;  %v608_v31 = vstv %s3026_s10  ;;  %s3373_s8 = sld [smem:[#allocation9 + $0x27]] }
  0xb7   : > { %v425_v56 = vperm.slane %v3012_v40, %v2999_v32  ;;  %v435_v57 = vperm.slane %v3014_v41, %v2999_v32  ;;  %v3070_v10 = vpop.permute.xlu2 %514  ;;  %v445_v12 = vperm.slane %v3028_v48, %v2999_v32  ;;  %v455_v13 = vperm.slane %v3030_v49, %v2999_v32  ;;  %s3383_s9 = sld [smem:[#allocation9 + $0x2b]] }
  0xb8   : > { %v678_v41 = vstv %s3078_s28  ;;  %s3385_s10 = sld [smem:[#allocation9 + $0x2f]] }
  0xb9   : > { %s3405_s28 = sld [smem:[#allocation9 + $0x31]] }
  0xba   : > { %v485_v55 = vstv %s2966_s7  ;;  %s3366_s7 = sld [smem:[#allocation9 + $0x23]] }
  0xbb   : > { %v495_v60 = vstv %s2968_s6  ;;  %s3362_s6 = sld [smem:[#allocation9 + $0x2e]] }
  0xbc   : > { %1515 = vrot.lane.b32.xlu1 %v2850_v4, %s4114_s17  ;;  %1513 = vrot.lane.b32.xlu0 %v2838_v1, %s4114_s17 }
  0xbd   : > { %1565 = vrot.lane.b32.xlu2 %v2844_v3, %s4114_s17 }
  0xbe   : > { %v351_v26 = vpop.permute.xlu1 %350  ;;  %v294_v27 = vpop.permute.xlu0 %293 }
  0xc4   : > { %1617 = vrot.lane.b32.xlu1 %v2865_v8, %s4114_s17  ;;  %1567 = vrot.lane.b32.xlu0 %v2856_v6, %s4114_s17 }
  0xc5   : > { %1619 = vrot.lane.b32.xlu2 %v2862_v7, %s4114_s17  ;;  %s3072_s17 = sld [smem:[#allocation9 + $0x1e]] }
  0xc6   : > { %v353_v58 = vpop.permute.xlu1 %352  ;;  %v296_v59 = vpop.permute.xlu0 %295 }
  0xc7   : > { %v354_v62 = vsel %vm297_vm0, %v351_v26, %v353_v58  ;;  %v355_v63 = vsel %vm297_vm0, %v353_v58, %v351_v26  ;;  %v298_v0 = vsel %vm297_vm0, %v294_v27, %v296_v59  ;;  %v299_v9 = vsel %vm297_vm0, %v296_v59, %v294_v27 }
  0xc8   : > { %v358_v14 = vrot.slane %v354_v62, 7  ;;  %v302_v15 = vrot.slane %v298_v0, 7  ;;  %v576_v26 = vstv %s2984_s16  ;;  %v586_v27 = vstv %s2988_s11  ;;  %s3295_s16 = sld [smem:[#allocation9 + $0x21]] }
  0xc9   : > { %v637_v0 = vstv %s3052_s1  ;;  %s3322_s11 = sld [smem:[#allocation9 + $0x2d]] }
  0xca   : > { %v359_v24 = vsel %vm284_vm2, %v355_v63, %v358_v14  ;;  %v303_v25 = vsel %vm284_vm2, %v299_v9, %v302_v15  ;;  %v627_v63 = vstv %s3040_s0  ;;  %s3387_s0 = sld [smem:[#allocation9 + $0x30]] }
  0xcb   : > { %v361_v28 = vsel %vm2980_vm5, %v359_v24, 0.0  ;;  %v305_v29 = vsel %vm2980_vm5, %v303_v25, 0.0  ;;  %s3392_s1 = sld [smem:[#allocation9 + $0x34]] }
  0xcc   : > { %v364_v33 = vmul.f32 %v363_v34, %v361_v28  ;;  %v374_v35 = vmul.f32 %v373_v36, %v361_v28  ;;  %v384_v39 = vmul.f32 %v383_v37, %v361_v28  ;;  %v394_v42 = vmul.f32 %v393_v38, %v361_v28  ;;  %1671 = vrot.lane.b32.xlu1 %v2853_v5, %s2684_s27 }
  0xcd   : > { %v308_v43 = vmul.f32 %v307_v44, %v305_v29  ;;  %v318_v58 = vmul.f32 %v317_v45, %v305_v29  ;;  %v328_v59 = vmul.f32 %v327_v46, %v305_v29  ;;  %v338_v62 = vmul.f32 %v337_v50, %v305_v29  ;;  %1669 = vrot.lane.b32.xlu0 %v2841_v2, %s2684_s27 }
  0xce   : > { %v369_v34 = vperm.slane %v364_v33, %v2999_v32  ;;  %v379_v36 = vperm.slane %v374_v35, %v2999_v32  ;;  %v465_v37 = vpop.permute.xlu1 %464  ;;  %v463_v38 = vpop.permute.xlu0 %462  ;;  %1721 = vrot.lane.b32.xlu2 %v2838_v1, %s2684_s27  ;;  %v389_v9 = vperm.slane %v384_v39, %v2999_v32  ;;  %v399_v14 = vperm.slane %v394_v42, %v2999_v32 }
  0xcf   : > { %v313_v44 = vperm.slane %v308_v43, %v2999_v32  ;;  %v323_v45 = vperm.slane %v318_v58, %v2999_v32  ;;  %v333_v46 = vperm.slane %v328_v59, %v2999_v32  ;;  %v343_v50 = vperm.slane %v338_v62, %v2999_v32  ;;  %v570_v35 = vpop.permute.xlu2 %569 }
  0xd0   : > { %v466_v15 = vsel %vm297_vm0, %v463_v38, %v465_v37  ;;  %v467_v24 = vsel %vm297_vm0, %v465_v37, %v463_v38  ;;  %v648_v42 = vstv %s3060_s2  ;;  %v659_v43 = vstv %s3072_s17  ;;  %s3398_s2 = sld [smem:[#allocation9 + $0x38]] }
  0xd1   : > { %v315_v25 = vadd.f32 %v313_v44, %v3024_v47  ;;  %v325_v28 = vadd.f32 %v323_v45, %v3038_v51  ;;  %v335_v29 = vadd.f32 %v333_v46, %v3043_v52  ;;  %v345_v33 = vadd.f32 %v343_v50, %v3046_v53  ;;  %s3403_s17 = sld [smem:[#allocation9 + $0x3c]] }
  0xd2   : > { %v470_v39 = vrot.slane %v466_v15, 7  ;;  %v735_v58 = vstv %s3084_s12  ;;  %v745_v51 = vstv %s3090_s24  ;;  %v755_v52 = vstv %s3098_s25  ;;  %s3410_s12 = sld [smem:[#allocation9 + $0x35]] }
  0xd3   : > { %v371_v59 = vadd.f32 %v369_v34, %v315_v25  ;;  %v381_v62 = vadd.f32 %v379_v36, %v325_v28  ;;  %v391_v18 = vadd.f32 %v389_v9, %v335_v29  ;;  %v401_v37 = vadd.f32 %v399_v14, %v345_v33  ;;  %s3416_s24 = sld [smem:[#allocation9 + $0x39]] }
  0xd4   : > { %v471_v47 = vsel %vm284_vm2, %v467_v24, %v470_v39  ;;  %1772 = vrot.lane.b32.xlu1 %v2844_v3, %s2684_s27  ;;  %v765_v53 = vstv %s3104_s29  ;;  %v688_v46 = vstv %s3109_s13  ;;  %s3422_s25 = sld [smem:[#allocation9 + $0x3d]] }
  0xd5   : > { %v427_v34 = vadd.f32 %v425_v56, %v371_v59  ;;  %v437_v36 = vadd.f32 %v435_v57, %v381_v62  ;;  %v447_v38 = vadd.f32 %v445_v12, %v391_v18  ;;  %v457_v44 = vadd.f32 %v455_v13, %v401_v37  ;;  %1723 = vrot.lane.b32.xlu0 %v2850_v4, %s2684_s27  ;;  %s3430_s29 = sld [smem:[#allocation9 + $0x36]] }
  0xd6   : > { %v473_v40 = vsel %vm2980_vm5, %v471_v47, 0.0  ;;  %v568_v56 = vpop.permute.xlu1 %567  ;;  %v517_v45 = vpop.permute.xlu0 %516  ;;  %v699_v57 = vstv %s3117_s21  ;;  %1774 = vrot.lane.b32.xlu2 %v2856_v6, %s2684_s27  ;;  %s3434_s13 = sld [smem:[#allocation9 + $0x3a]]  ;;  %vm2106_vm5 = vcmask 1041408  }
  0xd7   : > { %v476_v18 = vmul.f32 %v475_v54, %v473_v40  ;;  %v486_v48 = vmul.f32 %v485_v55, %v473_v40  ;;  %v496_v49 = vmul.f32 %v495_v60, %v473_v40  ;;  %v506_v23 = vmul.f32 %v505_v61, %v473_v40  ;;  %s3440_s21 = sld [smem:[#allocation9 + $0x3e]] }
  0xd8   : > { %v571_v12 = vsel %vm518_vm6, %v568_v56, %v570_v35  ;;  %v572_v13 = vsel %vm518_vm6, %v570_v35, %v568_v56  ;;  %v519_v50 = vsel %vm518_vm6, %v3070_v10, %v517_v45  ;;  %v520_v54 = vsel %vm518_vm6, %v517_v45, %v3070_v10  ;;  %v3197_v35 = vpop.permute.xlu2 %669 }
  0xd9   : > { %v481_v55 = vperm.slane %v476_v18, %v2999_v32  ;;  %v491_v60 = vperm.slane %v486_v48, %v2999_v32  ;;  %v501_v61 = vperm.slane %v496_v49, %v2999_v32  ;;  %v511_v9 = vperm.slane %v506_v23, %v2999_v32 }
  0xda   : > { %v573_v14 = vsel %vm265_vm1, %v572_v13, 0.0  ;;  %v578_v15 = vmul.f32 %v576_v26, %v571_v12  ;;  %v588_v24 = vmul.f32 %v586_v27, %v571_v12  ;;  %v599_v10 = vmul.f32 %v597_v30, %v571_v12 }
  0xdb   : > { %v483_v25 = vadd.f32 %v481_v55, %v427_v34  ;;  %v493_v28 = vadd.f32 %v491_v60, %v437_v36  ;;  %v3193_v29 = vadd.f32 %v501_v61, %v447_v38  ;;  %v3195_v33 = vadd.f32 %v511_v9, %v457_v44 }
  0xdc   : > { %v577_v39 = vmul.f32 %v576_v26, %v573_v14  ;;  %v581_v59 = vrot.slane %v578_v15, 4  ;;  %v587_v62 = vmul.f32 %v586_v27, %v573_v14  ;;  %v591_v37 = vrot.slane %v588_v24, 4  ;;  %1825 = vrot.lane.b32.xlu1 %v2862_v7, %s2684_s27 }
  0xdd   : > { %v598_v47 = vmul.f32 %v597_v30, %v573_v14  ;;  %v602_v34 = vrot.slane %v599_v10, 4  ;;  %v609_v36 = vmul.f32 %v608_v31, %v573_v14  ;;  %v610_v38 = vmul.f32 %v608_v31, %v571_v12  ;;  %1823 = vrot.lane.b32.xlu0 %v2865_v8, %s2684_s27  ;;  %s3428_s27 = sld [smem:[#allocation9 + $0x32]] }
  0xde   : > { %v582_v26 = vsel %vm530_vm7, %v577_v39, %v581_v59  ;;  %v592_v27 = vsel %vm530_vm7, %v587_v62, %v591_v37  ;;  %v521_v44 = vsel %vm265_vm1, %v520_v54, 0.0  ;;  %v526_v30 = vmul.f32 %v524_v16, %v519_v50  ;;  %v621_v40 = vpop.permute.xlu1 %620  ;;  %v619_v56 = vpop.permute.xlu0 %618  ;;  %1875 = vrot.lane.b32.xlu2 %v2841_v2, %s2685_s3 }
  0xdf   : > { %v593_v31 = vrot.slane %v592_v27, 7  ;;  %v603_v45 = vsel %vm530_vm7, %v598_v47, %v602_v34  ;;  %v613_v18 = vrot.slane %v610_v38, 4  ;;  %v525_v48 = vmul.f32 %v524_v16, %v521_v44 }
  0xe0   : > { %v604_v49 = vrot.slane %v603_v45, 6  ;;  %v529_v23 = vrot.slane %v526_v30, 4  ;;  %v536_v12 = vmul.f32 %v535_v17, %v521_v44  ;;  %v537_v13 = vmul.f32 %v535_v17, %v519_v50  ;;  %v724_v47 = vpop.permute.xlu2 %723 }
  0xe1   : > { %v614_v2 = vsel %vm530_vm7, %v609_v36, %v613_v18  ;;  %v547_v54 = vmul.f32 %v546_v19, %v521_v44  ;;  %v548_v55 = vmul.f32 %v546_v19, %v519_v50  ;;  %v558_v60 = vmul.f32 %v557_v20, %v521_v44 }
  0xe2   : > { %v615_v16 = vrot.slane %v614_v2, 5  ;;  %v531_v61 = vsel %vm530_vm7, %v525_v48, %v529_v23  ;;  %v540_v9 = vrot.slane %v537_v13, 4  ;;  %v559_v14 = vmul.f32 %v557_v20, %v519_v50 }
  0xe3   : > { %v533_v15 = vadd.f32 %v531_v61, %v483_v25  ;;  %v551_v17 = vrot.slane %v548_v55, 4  ;;  %v622_v24 = vsel %vm518_vm6, %v619_v56, %v621_v40  ;;  %v623_v10 = vsel %vm518_vm6, %v621_v40, %v619_v56 }
  0xe4   : > { %v541_v19 = vsel %vm530_vm7, %v536_v12, %v540_v9  ;;  %v562_v39 = vrot.slane %v559_v14, 4  ;;  %v624_v59 = vsel %vm265_vm1, %v623_v10, 0.0  ;;  %v629_v62 = vmul.f32 %v627_v63, %v622_v24  ;;  %1928 = vrot.lane.b32.xlu1 %v2838_v1, %s2685_s3 }
  0xe5   : > { %v542_v20 = vrot.slane %v541_v19, 7  ;;  %v552_v50 = vsel %vm530_vm7, %v547_v54, %v551_v17  ;;  %v584_v25 = vadd.f32 %v582_v26, %v533_v15  ;;  %v628_v37 = vmul.f32 %v627_v63, %v624_v59  ;;  %1877 = vrot.lane.b32.xlu0 %v2853_v5, %s2685_s3 }
  0xe6   : > { %v553_v34 = vrot.slane %v552_v50, 6  ;;  %v563_v36 = vsel %vm530_vm7, %v558_v60, %v562_v39  ;;  %v632_v38 = vrot.slane %v629_v62, 4  ;;  %v638_v1 = vmul.f32 %v637_v0, %v624_v59  ;;  %v722_v27 = vpop.permute.xlu1 %721  ;;  %v672_v44 = vpop.permute.xlu0 %671  ;;  %1930 = vrot.lane.b32.xlu2 %v2850_v4, %s2685_s3 }
  0xe7   : > { %v544_v26 = vadd.f32 %v542_v20, %v493_v28  ;;  %v564_v63 = vrot.slane %v563_v36, 5  ;;  %v639_v30 = vmul.f32 %v637_v0, %v622_v24  ;;  %v649_v5 = vmul.f32 %v648_v42, %v624_v59 }
  0xe8   : > { %v555_v40 = vadd.f32 %v553_v34, %v3193_v29  ;;  %v633_v56 = vsel %vm530_vm7, %v628_v37, %v632_v38  ;;  %v650_v45 = vmul.f32 %v648_v42, %v622_v24  ;;  %v660_v18 = vmul.f32 %v659_v43, %v624_v59 }
  0xe9   : > { %v566_v48 = vadd.f32 %v564_v63, %v3195_v33  ;;  %v595_v23 = vadd.f32 %v593_v31, %v544_v26  ;;  %v635_v12 = vadd.f32 %v633_v56, %v584_v25  ;;  %v642_v4 = vrot.slane %v639_v30, 4 }
  0xea   : > { %v606_v28 = vadd.f32 %v604_v49, %v555_v40  ;;  %v653_v13 = vrot.slane %v650_v45, 4  ;;  %v661_v0 = vmul.f32 %v659_v43, %v622_v24  ;;  %v726_v29 = vsel %vm725_vm8, %v722_v27, %v724_v47 }
  0xeb   : > { %v617_v2 = vadd.f32 %v615_v16, %v566_v48  ;;  %v643_v42 = vsel %vm530_vm7, %v638_v1, %v642_v4  ;;  %v727_v31 = vsel %vm725_vm8, %v724_v47, %v722_v27  ;;  %v730_v49 = vrot.slane %v726_v29, 7 }
  0xec   : > { %v644_v43 = vrot.slane %v643_v42, 7  ;;  %v654_v54 = vsel %vm530_vm7, %v649_v5, %v653_v13  ;;  %v664_v55 = vrot.slane %v661_v0, 4  ;;  %v673_v60 = vsel %vm518_vm6, %v3197_v35, %v672_v44  ;;  %1982 = vrot.lane.b32.xlu1 %v2856_v6, %s2685_s3  ;;  %v3307_v6 = vpop.permute.xlu2 %826 }
  0xed   : > { %v655_v22 = vrot.slane %v654_v54, 6  ;;  %v731_v16 = vsel %vm284_vm2, %v727_v31, %v730_v49  ;;  %v674_v61 = vsel %vm518_vm6, %v672_v44, %v3197_v35  ;;  %v680_v9 = vmul.f32 %v678_v41, %v673_v60  ;;  %1980 = vrot.lane.b32.xlu0 %v2844_v3, %s2685_s3 }
  0xee   : > { %v646_v14 = vadd.f32 %v644_v43, %v595_v23  ;;  %v665_v15 = vsel %vm530_vm7, %v660_v18, %v664_v55  ;;  %v733_v17 = vsel %vm3283_vm10, %v731_v16, 0.0  ;;  %v675_v35 = vsel %vm265_vm1, %v674_v61, 0.0  ;;  %v777_v24 = vpop.permute.xlu1 %776  ;;  %v775_v3 = vpop.permute.xlu0 %774  ;;  %2032 = vrot.lane.b32.xlu2 %v2865_v8, %s2685_s3 }
  0xef   : > { %v657_v10 = vadd.f32 %v655_v22, %v606_v28  ;;  %v666_v19 = vrot.slane %v665_v15, 5  ;;  %v736_v39 = vmul.f32 %v735_v58, %v733_v17  ;;  %v746_v59 = vmul.f32 %v745_v51, %v733_v17 }
  0xf0   : > { %v756_v62 = vmul.f32 %v755_v52, %v733_v17  ;;  %v3328_v20 = vmul.f32 %v765_v53, %v733_v17  ;;  %v679_v50 = vmul.f32 %v678_v41, %v675_v35  ;;  %v683_v8 = vrot.slane %v680_v9, 4 }
  0xf1   : > { %v668_v25 = vadd.f32 %v666_v19, %v617_v2  ;;  %v741_v37 = vperm.slane %v736_v39, %v2999_v32  ;;  %v710_v58 = vstv %s3272_s15  ;;  %v751_v51 = vperm.slane %v746_v59, %v2999_v32  ;;  %s3452_s15 = sld [smem:[#allocation9 + $0x37]] }
  0xf2   : > { %v684_v52 = vsel %vm530_vm7, %v679_v50, %v683_v8  ;;  %v689_v53 = vmul.f32 %v688_v46, %v675_v35  ;;  %v690_v47 = vmul.f32 %v688_v46, %v673_v60  ;;  %v761_v41 = vperm.slane %v756_v62, %v2999_v32 }
  0xf3   : > { %v686_v34 = vadd.f32 %v684_v52, %v635_v12  ;;  %v700_v36 = vmul.f32 %v699_v57, %v675_v35  ;;  %v701_v38 = vmul.f32 %v699_v57, %v673_v60  ;;  %v771_v1 = vperm.slane %v3328_v20, %v2999_v32 }
  0xf4   : > { %v693_v27 = vrot.slane %v690_v47, 4  ;;  %v711_v44 = vmul.f32 %v710_v58, %v675_v35  ;;  %v712_v26 = vmul.f32 %v710_v58, %v673_v60  ;;  %v787_v5 = vstv %s3295_s16  ;;  %v881_v4 = vpop.permute.xlu2 %880  ;;  %s3459_s16 = sld [smem:[#allocation9 + $0x3b]] }
  0xf5   : > { %v704_v63 = vrot.slane %v701_v38, 4  ;;  %v743_v30 = vadd.f32 %v741_v37, %v686_v34  ;;  %v797_v40 = vstv %s3305_s18  ;;  %2034 = vrot.lane.b32.xlu0 %v2862_v7, %s2685_s3  ;;  %v778_v56 = vsel %vm725_vm8, %v775_v3, %v777_v24  ;;  %s3446_s3 = sld [smem:[#allocation9 + $0x33]] }
  0xf6   : > { %v694_v46 = vsel %vm530_vm7, %v689_v53, %v693_v27  ;;  %v715_v57 = vrot.slane %v712_v26, 4  ;;  %v779_v45 = vsel %vm725_vm8, %v777_v24, %v775_v3  ;;  %v829_v18 = vpop.permute.xlu0 %828  ;;  %v807_v23 = vstv %s3314_s22  ;;  %v879_v29 = vpop.permute.xlu1 %878  ;;  %s3465_s18 = sld [smem:[#allocation9 + $0x44]] }
  0xf7   : > { %v695_v48 = vrot.slane %v694_v46, 7  ;;  %v705_v7 = vsel %vm530_vm7, %v700_v36, %v704_v63  ;;  %v782_v12 = vrot.slane %v778_v56, 7  ;;  %v817_v0 = vstv %s3322_s11  ;;  %s3467_s22 = sld [smem:[#allocation9 + $0x48]] }
  0xf8   : > { %v706_v28 = vrot.slane %v705_v7, 6  ;;  %v716_v13 = vsel %vm530_vm7, %v711_v44, %v715_v57  ;;  %v839_v2 = vstv %s3332_s14  ;;  %v849_v43 = vstv %s3336_s26  ;;  %s3472_s11 = sld [smem:[#allocation9 + $0x40]] }
  0xf9   : > { %v697_v42 = vadd.f32 %v695_v48, %v646_v14  ;;  %v717_v31 = vrot.slane %v716_v13, 5  ;;  %v783_v49 = vsel %vm284_vm2, %v779_v45, %v782_v12  ;;  %v830_v60 = vsel %vm725_vm8, %v3307_v6, %v829_v18  ;;  %s3478_s14 = sld [smem:[#allocation9 + $0x3f]] }
  0xfa   : > { %v708_v54 = vadd.f32 %v706_v28, %v657_v10  ;;  %v785_v55 = vsel %vm3283_vm10, %v783_v49, 0.0  ;;  %v831_v22 = vsel %vm725_vm8, %v829_v18, %v3307_v6  ;;  %v834_v24 = vrot.slane %v830_v60, 7  ;;  %s3484_s26 = sld [smem:[#allocation9 + $0x4c]] }
  0xfb   : > { %v719_v16 = vadd.f32 %v717_v31, %v668_v25  ;;  %v753_v61 = vadd.f32 %v751_v51, %v697_v42  ;;  %v788_v9 = vmul.f32 %v787_v5, %v785_v55  ;;  %v798_v14 = vmul.f32 %v797_v40, %v785_v55 }
  0xfc   : > { %v763_v15 = vadd.f32 %v761_v41, %v708_v54  ;;  %v808_v17 = vmul.f32 %v807_v23, %v785_v55  ;;  %v818_v35 = vmul.f32 %v817_v0, %v785_v55  ;;  %v859_v19 = vstv %s3355_s30  ;;  %s3490_s30 = sld [smem:[#allocation9 + $0x41]] }
  0xfd   : > { %v773_v3 = vadd.f32 %v771_v1, %v719_v16  ;;  %v793_v10 = vperm.slane %v788_v9, %v2999_v32  ;;  %v803_v6 = vperm.slane %v798_v14, %v2999_v32  ;;  %v869_v62 = vstv %s3362_s6  ;;  %v984_v1 = vpop.permute.xlu2 %983  ;;  %s3497_s6 = sld [smem:[#allocation9 + $0x45]] }
  0xfe   : > { %v813_v39 = vperm.slane %v808_v17, %v2999_v32  ;;  %v823_v59 = vperm.slane %v818_v35, %v2999_v32  ;;  %v835_v20 = vsel %vm284_vm2, %v831_v22, %v834_v24  ;;  %v931_v50 = vpop.permute.xlu0 %930  ;;  %v891_v58 = vstv %s3366_s7  ;;  %s3500_s7 = sld [smem:[#allocation9 + $0x49]] }
  0xff   : > { %v795_v8 = vadd.f32 %v793_v10, %v743_v30  ;;  %v805_v25 = vadd.f32 %v803_v6, %v753_v61  ;;  %v837_v37 = vsel %vm3283_vm10, %v835_v20, 0.0  ;;  %v901_v36 = vstv %s3373_s8  ;;  %v933_v30 = vpop.permute.xlu1 %932  ;;  %s3507_s8 = sld [smem:[#allocation9 + $0x4d]] }
 0x100   : > { %v815_v51 = vadd.f32 %v813_v39, %v763_v15  ;;  %v825_v52 = vadd.f32 %v823_v59, %v773_v3  ;;  %v840_v53 = vmul.f32 %v839_v2, %v837_v37  ;;  %v850_v47 = vmul.f32 %v849_v43, %v837_v37 }
 0x101   : > { %v860_v41 = vmul.f32 %v859_v19, %v837_v37  ;;  %v870_v34 = vmul.f32 %v869_v62, %v837_v37  ;;  %v882_v38 = vsel %vm725_vm8, %v879_v29, %v881_v4  ;;  %v883_v26 = vsel %vm725_vm8, %v881_v4, %v879_v29 }
 0x102   : > { %v845_v27 = vperm.slane %v840_v53, %v2999_v32  ;;  %v855_v44 = vperm.slane %v850_v47, %v2999_v32  ;;  %v886_v63 = vrot.slane %v882_v38, 7  ;;  %v911_v46 = vstv %s3383_s9  ;;  %s3513_s9 = sld [smem:[#allocation9 + $0x42]] }
 0x103   : > { %v865_v5 = vperm.slane %v860_v41, %v2999_v32  ;;  %v875_v40 = vperm.slane %v870_v34, %v2999_v32  ;;  %v921_v57 = vstv %s3385_s10  ;;  %v935_v0 = vsel %vm934_vm11, %v931_v50, %v933_v30  ;;  %s3515_s10 = sld [smem:[#allocation9 + $0x46]] }
 0x104   : > { %v847_v56 = vadd.f32 %v845_v27, %v795_v8  ;;  %v857_v45 = vadd.f32 %v855_v44, %v805_v25  ;;  %v887_v18 = vsel %vm284_vm2, %v883_v26, %v886_v63  ;;  %v944_v2 = vstv %s3387_s0  ;;  %s3527_s0 = sld [smem:[#allocation9 + $0x4a]] }
 0x105   : > { %v867_v48 = vadd.f32 %v865_v5, %v815_v51  ;;  %v877_v7 = vadd.f32 %v875_v40, %v825_v52  ;;  %v889_v23 = vsel %vm3283_vm10, %v887_v18, 0.0  ;;  %v954_v42 = vstv %s3392_s1  ;;  %v1038_v35 = vpop.permute.xlu2 %1037  ;;  %s3535_s1 = sld [smem:[#allocation9 + $0x4e]] }
 0x106   : > { %v892_v12 = vmul.f32 %v891_v58, %v889_v23  ;;  %v902_v4 = vmul.f32 %v901_v36, %v889_v23  ;;  %v912_v28 = vmul.f32 %v911_v46, %v889_v23  ;;  %v922_v13 = vmul.f32 %v921_v57, %v889_v23  ;;  %v986_v29 = vpop.permute.xlu0 %985 }
 0x107   : > { %v964_v31 = vstv %s3398_s2  ;;  %v974_v49 = vstv %s3403_s17  ;;  %v936_v43 = vsel %vm934_vm11, %v933_v30, %v931_v50  ;;  %v939_v54 = vrot.slane %v935_v0, 7  ;;  %v1036_v10 = vpop.permute.xlu1 %1035  ;;  %s3548_s2 = sld [smem:[#allocation9 + $0x47]] }
 0x108   : > { %v897_v33 = vperm.slane %v892_v12, %v2999_v32  ;;  %v996_v55 = vstv %s3405_s28  ;;  %v907_v60 = vperm.slane %v902_v4, %v2999_v32  ;;  %v917_v22 = vperm.slane %v912_v28, %v2999_v32  ;;  %s3565_s17 = sld [smem:[#allocation9 + $0x4b]] }
 0x109   : > { %v927_v16 = vperm.slane %v922_v13, %v2999_v32  ;;  %v1006_v61 = vstv %s3410_s12  ;;  %v940_v9 = vsel %vm284_vm2, %v936_v43, %v939_v54  ;;  %v1016_v14 = vstv %s3416_s24  ;;  %s3579_s28 = sld [smem:[#allocation9 + $0x4f]] }
 0x10a   : > { %v1026_v15 = vstv %s3422_s25  ;;  %v987_v17 = vsel %vm934_vm11, %v984_v1, %v986_v29  ;;  %v899_v24 = vadd.f32 %v897_v33, %v847_v56  ;;  %v942_v3 = vsel %vm263_vm3, %v940_v9, 0.0  ;;  %s3586_s12 = sld [smem:[#allocation9 + $0x50]] }
 0x10b   : > { %v988_v6 = vsel %vm934_vm11, %v986_v29, %v984_v1  ;;  %v991_v19 = vrot.slane %v987_v17, 7  ;;  %v945_v39 = vmul.f32 %v944_v2, %v942_v3  ;;  %v955_v59 = vmul.f32 %v954_v42, %v942_v3  ;;  %s3594_s24 = sld [smem:[#allocation9 + $0x54]] }
 0x10c   : > { %v965_v62 = vmul.f32 %v964_v31, %v942_v3  ;;  %v975_v20 = vmul.f32 %v974_v49, %v942_v3  ;;  %v909_v50 = vadd.f32 %v907_v60, %v857_v45  ;;  %v919_v8 = vadd.f32 %v917_v22, %v867_v48  ;;  %v3518_v60 = vld [vmem:[%s2816_s5] sm:$0xff]  ;;  %s3539_s5 = sld [smem:[#allocation9 + $0x43]] }
 0x10d   : > { %v992_v25 = vsel %vm284_vm2, %v988_v6, %v991_v19  ;;  %v1039_v37 = vsel %vm934_vm11, %v1036_v10, %v1038_v35  ;;  %v929_v58 = vadd.f32 %v927_v16, %v877_v7  ;;  %v950_v51 = vperm.slane %v945_v39, %v2999_v32  ;;  %s3599_s25 = sld [smem:[#allocation9 + $0x58]] }
 0x10e   : > { %v960_v52 = vperm.slane %v955_v59, %v2999_v32  ;;  %v1040_v53 = vsel %vm934_vm11, %v1038_v35, %v1036_v10  ;;  %v970_v47 = vperm.slane %v965_v62, %v2999_v32  ;;  %v980_v41 = vperm.slane %v975_v20, %v2999_v32  ;;  %v3492_v26 = vpop.permute.xlu0 %1087  ;;  %v3546_v62 = vpop.permute.xlu2 %1245 }
 0x10f   : > { %v994_v34 = vsel %vm263_vm3, %v992_v25, 0.0  ;;  %v1043_v36 = vrot.slane %v1039_v37, 7  ;;  %v1048_v38 = vstv %s3428_s27  ;;  %v1058_v1 = vstv %s3430_s29  ;;  %v1090_v2 = vpop.permute.xlu1 %1089  ;;  %s3605_s27 = sld [smem:[#allocation9 + $0x5c]] }
 0x110   : > { %v1068_v27 = vstv %s3434_s13  ;;  %v1078_v44 = vstv %s3440_s21  ;;  %v997_v63 = vmul.f32 %v996_v55, %v994_v34  ;;  %v1007_v30 = vmul.f32 %v1006_v61, %v994_v34  ;;  %s3610_s29 = sld [smem:[#allocation9 + $0x51]] }
 0x111   : > { %v1017_v5 = vmul.f32 %v1016_v14, %v994_v34  ;;  %v1027_v40 = vmul.f32 %v1026_v15, %v994_v34  ;;  %v952_v46 = vadd.f32 %v950_v51, %v899_v24  ;;  %v1044_v57 = vsel %vm284_vm2, %v1040_v53, %v1043_v36  ;;  %s3614_s13 = sld [smem:[#allocation9 + $0x55]] }
 0x112   : > { %v1100_v56 = vstv %s3446_s3  ;;  %v1110_v45 = vstv %s3452_s15  ;;  %v962_v18 = vadd.f32 %v960_v52, %v909_v50  ;;  %v972_v48 = vadd.f32 %v970_v47, %v919_v8  ;;  %s3620_s21 = sld [smem:[#allocation9 + $0x59]] }
 0x113   : > { %v982_v7 = vadd.f32 %v980_v41, %v929_v58  ;;  %v1002_v23 = vperm.slane %v997_v63, %v2999_v32  ;;  %v1046_v12 = vsel %vm263_vm3, %v1044_v57, 0.0  ;;  %v1120_v4 = vstv %s3459_s16  ;;  %s3625_s3 = sld [smem:[#allocation9 + $0x5d]] }
 0x114   : > { %v1144_v28 = vstv %s3465_s18  ;;  %v1151_v13 = vstv %s3467_s22  ;;  %v1012_v0 = vperm.slane %v1007_v30, %v2999_v32  ;;  %v1022_v29 = vperm.slane %v1017_v5, %v2999_v32  ;;  %s3629_s15 = sld [smem:[#allocation9 + $0x52]] }
 0x115   : > { %v1032_v33 = vperm.slane %v1027_v40, %v2999_v32  ;;  %v1140_v42 = vstv %s3472_s11  ;;  %v1049_v31 = vmul.f32 %v1048_v38, %v1046_v12  ;;  %v1059_v49 = vmul.f32 %v1058_v1, %v1046_v12  ;;  %s3631_s16 = sld [smem:[#allocation9 + $0x56]] }
 0x116   : > { %v1069_v43 = vmul.f32 %v1068_v27, %v1046_v12  ;;  %v1079_v54 = vmul.f32 %v1078_v44, %v1046_v12  ;;  %v1004_v55 = vadd.f32 %v1002_v23, %v952_v46  ;;  %v3521_v22 = vmul.f32 %v3518_v60, %v1144_v28  ;;  %v3550_v20 = vpop.permute.xlu0 %1247  ;;  %s3637_s18 = sld [smem:[#allocation9 + $0x5a]] }
 0x117   : > { %v3524_v16 = vmul.f32 %v3518_v60, %v1151_v13  ;;  %v1158_v61 = vstv %s3484_s26  ;;  %v1054_v9 = vperm.slane %v1049_v31, %v2999_v32  ;;  %v1130_v14 = vstv %s3478_s14  ;;  %v3577_v46 = vpop.permute.xlu1 %1298  ;;  %s3642_s22 = sld [smem:[#allocation9 + $0x5e]] }
 0x118   : > { %v3532_v15 = vmul.f32 %v3518_v60, %v1140_v42  ;;  %v1165_v17 = vstv %s3490_s30  ;;  %v1014_v35 = vadd.f32 %v1012_v0, %v962_v18  ;;  %v1024_v24 = vadd.f32 %v1022_v29, %v972_v48  ;;  %s3651_s11 = sld [smem:[#allocation9 + $0x53]] }
 0x119   : > { %v1064_v3 = vperm.slane %v1059_v49, %v2999_v32  ;;  %v1074_v10 = vperm.slane %v1069_v43, %v2999_v32  ;;  %v1034_v6 = vadd.f32 %v1032_v33, %v982_v7  ;;  %v1084_v19 = vperm.slane %v1079_v54, %v2999_v32  ;;  %v1301_v54 = vpop.permute.xlu2 %1300  ;;  %s3661_s14 = sld [smem:[#allocation9 + $0x57]] }
 0x11a   : > { %v1147_v39 = vrot.slane %v3521_v22, 7  ;;  %v3544_v59 = vmul.f32 %v3518_v60, %v1158_v61  ;;  %v1056_v50 = vadd.f32 %v1054_v9, %v1004_v55  ;;  %v1154_v8 = vrot.slane %v3524_v16, 6  ;;  %s3666_s26 = sld [smem:[#allocation9 + $0x5b]] }
 0x11b   : > { %v3554_v25 = vmul.f32 %v3518_v60, %v1165_v17  ;;  %v1177_v37 = vstv %s3500_s7  ;;  %v1173_v58 = vstv %s3497_s6  ;;  %v1184_v52 = vstv %s3507_s8  ;;  %s3669_s30 = sld [smem:[#allocation9 + $0x5f]] }
 0x11c   : > { %v3559_v51 = vmul.f32 %v3518_v60, %v1177_v37  ;;  %v1091_v53 = vsel %vm934_vm11, %v3492_v26, %v1090_v2  ;;  %v1066_v47 = vadd.f32 %v1064_v3, %v1014_v35  ;;  %v1076_v41 = vadd.f32 %v1074_v10, %v1024_v24  ;;  %s3690_s6 = sld [smem:[#allocation9 + $0x60]] }
 0x11d   : > { %v1095_v34 = vrot.slane %v1091_v53, 7  ;;  %v1191_v36 = vstv %s3513_s9  ;;  %v1086_v38 = vadd.f32 %v1084_v19, %v1034_v6  ;;  %v1161_v1 = vrot.slane %v3544_v59, 5  ;;  %s3694_s7 = sld [smem:[#allocation9 + $0x64]] }
 0x11e   : > { %v1185_v27 = vmul.f32 %v3518_v60, %v1184_v52  ;;  %v1092_v44 = vsel %vm934_vm11, %v1090_v2, %v3492_v26  ;;  %v2325_v63 = vrot.slane %v3554_v25, 9  ;;  %v1174_v30 = vmul.f32 %v3518_v60, %v1173_v58  ;;  %v3612_v55 = vpop.permute.xlu0 %1350  ;;  %s3697_s8 = sld [smem:[#allocation9 + $0x68]] }
 0x11f   : > { %v1180_v5 = vrot.slane %v3559_v51, 7  ;;  %v1096_v40 = vsel %vm284_vm2, %v1092_v44, %v1095_v34  ;;  %v1192_v26 = vmul.f32 %v3518_v60, %v1191_v36  ;;  %v1199_v18 = vstv %s3515_s10  ;;  %s3712_s9 = sld [smem:[#allocation9 + $0x6c]] }
 0x120   : > { %v1098_v57 = vsel %vm263_vm3, %v1096_v40, 0.0  ;;  %v1211_v48 = vstv %s3535_s1  ;;  %v1187_v13 = vrot.slane %v1185_v27, 6  ;;  %v1207_v0 = vstv %s3527_s0  ;;  %s3719_s10 = sld [smem:[#allocation9 + $0x61]] }
 0x121   : > { %v1101_v7 = vmul.f32 %v1100_v56, %v1098_v57  ;;  %v1111_v23 = vmul.f32 %v1110_v45, %v1098_v57  ;;  %v1121_v12 = vmul.f32 %v1120_v4, %v1098_v57  ;;  %v1131_v28 = vmul.f32 %v1130_v14, %v1098_v57  ;;  %s3721_s0 = sld [smem:[#allocation9 + $0x65]] }
 0x122   : > { %v1218_v29 = vstv %s3539_s5  ;;  %v1226_v33 = vstv %s3548_s2  ;;  %v2330_v4 = vrot.slane %v1192_v26, 10  ;;  %v1200_v31 = vmul.f32 %v3518_v60, %v1199_v18  ;;  %s3728_s1 = sld [smem:[#allocation9 + $0x69]] }
 0x123   : > { %v1106_v2 = vperm.slane %v1101_v7, %v2999_v32  ;;  %v1116_v42 = vperm.slane %v1111_v23, %v2999_v32  ;;  %v1126_v56 = vperm.slane %v1121_v12, %v2999_v32  ;;  %v1136_v45 = vperm.slane %v1131_v28, %v2999_v32  ;;  %s3731_s5 = sld [smem:[#allocation9 + $0x6d]] }
 0x124   : > { %v1212_v49 = vmul.f32 %v3518_v60, %v1211_v48  ;;  %v1234_v43 = vstv %s3565_s17  ;;  %v1219_v17 = vmul.f32 %v3518_v60, %v1218_v29  ;;  %v1227_v35 = vmul.f32 %v3518_v60, %v1226_v33  ;;  %s3741_s2 = sld [smem:[#allocation9 + $0x62]] }
 0x125   : > { %v1108_v16 = vadd.f32 %v1106_v2, %v1056_v50  ;;  %v1118_v61 = vadd.f32 %v1116_v42, %v1066_v47  ;;  %v1128_v9 = vadd.f32 %v1126_v56, %v1076_v41  ;;  %v1138_v14 = vadd.f32 %v1136_v45, %v1086_v38  ;;  %s3753_s17 = sld [smem:[#allocation9 + $0x66]] }
 0x126   : > { %v1235_v24 = vmul.f32 %v3518_v60, %v1234_v43  ;;  %v2332_v59 = vrot.slane %v1200_v31, 9  ;;  %v1208_v50 = vmul.f32 %v3518_v60, %v1207_v0  ;;  %v1214_v25 = vrot.slane %v1212_v49, 7 }
 0x127   : > { %v1142_v3 = vadd.f32 %v3532_v15, %v1108_v16  ;;  %v1149_v10 = vadd.f32 %v1147_v39, %v1118_v61  ;;  %v1156_v6 = vadd.f32 %v1154_v8, %v1128_v9  ;;  %v1163_v19 = vadd.f32 %v1161_v1, %v1138_v14  ;;  %v1353_v39 = vpop.permute.xlu1 %1352 }
 0x128   : > { %v1242_v37 = vstv %s3579_s28  ;;  %v2336_v8 = vrot.slane %v1219_v17, 11  ;;  %v2338_v52 = vrot.slane %v1227_v35, 10  ;;  %v2340_v53 = vrot.slane %v1235_v24, 9  ;;  %s3756_s28 = sld [smem:[#allocation9 + $0x6a]] }
 0x129   : > { %v1171_v58 = vadd.f32 %v2325_v63, %v1142_v3  ;;  %v1175_v51 = vadd.f32 %v1174_v30, %v1149_v10  ;;  %v1182_v15 = vadd.f32 %v1180_v5, %v1156_v6  ;;  %v1189_v22 = vadd.f32 %v1187_v13, %v1163_v19 }
 0x12a   : > { %v1251_v47 = vsel %vm1249_vm12, %v3550_v20, %v3546_v62  ;;  %v1243_v41 = vmul.f32 %v3518_v60, %v1242_v37  ;;  %v1259_v34 = vstv %s3586_s12  ;;  %v1269_v36 = vstv %s3594_s24  ;;  %s3760_s12 = sld [smem:[#allocation9 + $0x6e]] }
 0x12b   : > { %v1197_v38 = vadd.f32 %v2330_v4, %v1171_v58  ;;  %v1279_v1 = vstv %s3599_s25  ;;  %v1289_v27 = vstv %s3605_s27  ;;  %v1250_v44 = vsel %vm1249_vm12, %v3546_v62, %v3550_v20  ;;  %v1403_v62 = vpop.permute.xlu2 %1402  ;;  %v1405_v20 = vpop.permute.xlu0 %1404  ;;  %s3774_s24 = sld [smem:[#allocation9 + $0x63]] }
 0x12c   : > { %v1254_v63 = vrot.slane %v1251_v47, 7  ;;  %v1205_v30 = vadd.f32 %v2332_v59, %v1175_v51  ;;  %v1209_v5 = vadd.f32 %v1208_v50, %v1182_v15  ;;  %v1216_v40 = vadd.f32 %v1214_v25, %v1189_v22  ;;  %s3782_s25 = sld [smem:[#allocation9 + $0x67]] }
 0x12d   : > { %v1311_v57 = vstv %s3610_s29  ;;  %v1321_v26 = vstv %s3614_s13  ;;  %v1302_v18 = vsel %vm1249_vm12, %v3577_v46, %v1301_v54  ;;  %v1303_v48 = vsel %vm1249_vm12, %v1301_v54, %v3577_v46  ;;  %s3792_s27 = sld [smem:[#allocation9 + $0x6b]] }
 0x12e   : > { %v1255_v60 = vsel %vm284_vm2, %v1250_v44, %v1254_v63  ;;  %v1224_v7 = vadd.f32 %v2336_v8, %v1197_v38  ;;  %v1331_v12 = vstv %s3620_s21  ;;  %v1306_v28 = vrot.slane %v1303_v48, 7  ;;  %s3797_s29 = sld [smem:[#allocation9 + $0x6f]] }
 0x12f   : > { %v1257_v23 = vsel %vm264_vm9, %v1255_v60, 0.0  ;;  %v1232_v33 = vadd.f32 %v2338_v52, %v1205_v30  ;;  %v1240_v2 = vadd.f32 %v2340_v53, %v1209_v5  ;;  %v1244_v42 = vadd.f32 %v1243_v41, %v1216_v40  ;;  %v3684_v9 = vpop.permute.xlu1 %1460  ;;  %s3803_s13 = sld [smem:[#allocation9 + $0x70]] }
 0x130   : > { %v1260_v13 = vmul.f32 %v1259_v34, %v1257_v23  ;;  %v1270_v0 = vmul.f32 %v1269_v36, %v1257_v23  ;;  %v1280_v46 = vmul.f32 %v1279_v1, %v1257_v23  ;;  %v1290_v29 = vmul.f32 %v1289_v27, %v1257_v23  ;;  %s3810_s21 = sld [smem:[#allocation9 + $0x74]] }
 0x131   : > { %v1307_v56 = vsel %vm284_vm2, %v1302_v18, %v1306_v28  ;;  %v1341_v45 = vstv %s3625_s3  ;;  %v1363_v4 = vstv %s3629_s15  ;;  %v1373_v31 = vstv %s3631_s16  ;;  %s3812_s3 = sld [smem:[#allocation9 + $0x78]] }
 0x132   : > { %v1383_v49 = vstv %s3637_s18  ;;  %v1309_v43 = vsel %vm264_vm9, %v1307_v56, 0.0  ;;  %v1393_v54 = vstv %s3642_s22  ;;  %v1354_v16 = vsel %vm1249_vm12, %v3612_v55, %v1353_v39  ;;  %s3817_s15 = sld [smem:[#allocation9 + $0x7c]] }
 0x133   : > { %v1355_v61 = vsel %vm1249_vm12, %v1353_v39, %v3612_v55  ;;  %v1265_v14 = vperm.slane %v1260_v13, %v2999_v32  ;;  %v1275_v17 = vperm.slane %v1270_v0, %v2999_v32  ;;  %v1285_v35 = vperm.slane %v1280_v46, %v2999_v32  ;;  %v1463_v53 = vpop.permute.xlu2 %1462  ;;  %v3706_v47 = vpop.permute.xlu0 %1513  ;;  %s3821_s16 = sld [smem:[#allocation9 + $0x71]] }
 0x134   : > { %v1295_v24 = vperm.slane %v1290_v29, %v2999_v32  ;;  %v1312_v3 = vmul.f32 %v1311_v57, %v1309_v43  ;;  %v1322_v10 = vmul.f32 %v1321_v26, %v1309_v43  ;;  %v1332_v6 = vmul.f32 %v1331_v12, %v1309_v43  ;;  %s3845_s18 = sld [smem:[#allocation9 + $0x75]] }
 0x135   : > { %v1342_v19 = vmul.f32 %v1341_v45, %v1309_v43  ;;  %v1267_v59 = vadd.f32 %v1265_v14, %v1224_v7  ;;  %v1358_v50 = vrot.slane %v1355_v61, 7  ;;  %v1415_v55 = vstv %s3651_s11  ;;  %s3854_s22 = sld [smem:[#allocation9 + $0x79]] }
 0x136   : > { %v1425_v25 = vstv %s3661_s14  ;;  %v1277_v37 = vadd.f32 %v1275_v17, %v1232_v33  ;;  %v1287_v58 = vadd.f32 %v1285_v35, %v1240_v2  ;;  %v1297_v51 = vadd.f32 %v1295_v24, %v1244_v42  ;;  %s3856_s11 = sld [smem:[#allocation9 + $0x7d]] }
 0x137   : > { %v1435_v15 = vstv %s3666_s26  ;;  %v1317_v22 = vperm.slane %v1312_v3, %v2999_v32  ;;  %v1359_v39 = vsel %vm284_vm2, %v1354_v16, %v1358_v50  ;;  %v1407_v8 = vsel %vm1249_vm12, %v1405_v20, %v1403_v62  ;;  %v1516_v23 = vpop.permute.xlu1 %1515  ;;  %s3864_s14 = sld [smem:[#allocation9 + $0x72]] }
 0x138   : > { %v3704_v52 = vadd.s32 128, %v2903_v11  ;;  %v1327_v41 = vperm.slane %v1322_v10, %v2999_v32  ;;  %v1337_v34 = vperm.slane %v1332_v6, %v2999_v32  ;;  %v1347_v36 = vperm.slane %v1342_v19, %v2999_v32  ;;  %s3867_s26 = sld [smem:[#allocation9 + $0x76]] }
 0x139   : > { %v1445_v38 = vstv %s3669_s30  ;;  %v1361_v1 = vsel %vm264_vm9, %v1359_v39, 0.0  ;;  %v1406_v27 = vsel %vm1249_vm12, %v1403_v62, %v1405_v20  ;;  %v1410_v44 = vrot.slane %v1407_v8, 7  ;;  %s3871_s30 = sld [smem:[#allocation9 + $0x7a]] }
 0x13a   : > { %vm268_vm13 = vcmp.lt.s32.totalorder %v3704_v52, 240  ;;  %v1364_v63 = vmul.f32 %v1363_v4, %v1361_v1  ;;  %v1374_v30 = vmul.f32 %v1373_v31, %v1361_v1  ;;  %v1384_v5 = vmul.f32 %v1383_v49, %v1361_v1 }
 0x13b   : > { %v1394_v40 = vmul.f32 %v1393_v54, %v1361_v1  ;;  %v1319_v57 = vadd.f32 %v1317_v22, %v1267_v59  ;;  %v1411_v60 = vsel %vm284_vm2, %v1406_v27, %v1410_v44  ;;  %v4119_v26 = vmov 0   ;;  %v1566_v35 = vpop.permute.xlu2 %1565  ;;  %v1568_v24 = vpop.permute.xlu0 %1567 }
 0x13c   : > { %v1455_v18 = vsel %vm268_vm13, 1, %v4119_v26  ;;  %v1329_v48 = vadd.f32 %v1327_v41, %v1277_v37  ;;  %v1339_v62 = vadd.f32 %v1337_v34, %v1287_v58  ;;  %v1349_v20 = vadd.f32 %v1347_v36, %v1297_v51 }
 0x13d   : > { %v1369_v7 = vperm.slane %v1364_v63, %v2999_v32  ;;  %v1379_v12 = vperm.slane %v1374_v30, %v2999_v32  ;;  %v1389_v28 = vperm.slane %v1384_v5, %v2999_v32  ;;  %v1413_v13 = vsel %vm264_vm9, %v1411_v60, 0.0 }
 0x13e   : > { %v1456_v0 = vrot.slane %v1455_v18, 7  ;;  %v1399_v46 = vperm.slane %v1394_v40, %v2999_v32  ;;  %v1474_v29 = vstv %s3690_s6  ;;  %v1484_v33 = vstv %s3694_s7  ;;  %s3876_s6 = sld [smem:[#allocation9 + $0x7e]] }
 0x13f   : > { %v1494_v2 = vstv %s3697_s8  ;;  %v1416_v42 = vmul.f32 %v1415_v55, %v1413_v13  ;;  %v1426_v56 = vmul.f32 %v1425_v25, %v1413_v13  ;;  %v1436_v45 = vmul.f32 %v1435_v15, %v1413_v13  ;;  %s3887_s7 = sld [smem:[#allocation9 + $0x73]] }
 0x140   : > { %v1446_v4 = vmul.f32 %v1445_v38, %v1413_v13  ;;  %v3744_v31 = vsel %vm284_vm2, 1, %v1456_v0  ;;  %v1504_v49 = vstv %s3712_s9  ;;  %v1465_v43 = vsel %vm1464_vm14, %v3684_v9, %v1463_v53  ;;  %v1618_v38 = vpop.permute.xlu1 %1617  ;;  %s3892_s8 = sld [smem:[#allocation9 + $0x77]] }
 0x141   : > { %v1466_v54 = vsel %vm1464_vm14, %v1463_v53, %v3684_v9  ;;  %v1371_v16 = vadd.f32 %v1369_v7, %v1319_v57  ;;  %v1381_v61 = vadd.f32 %v1379_v12, %v1329_v48  ;;  %v1391_v14 = vadd.f32 %v1389_v28, %v1339_v62  ;;  %s3900_s9 = sld [smem:[#allocation9 + $0x7b]] }
 0x142   : > { %v1421_v17 = vperm.slane %v1416_v42, %v2999_v32  ;;  %v1401_v3 = vadd.f32 %v1399_v46, %v1349_v20  ;;  %vm1458_vm15 = vcmp.ne.s32.totalorder %v3744_v31, 0  ;;  %v1469_v10 = vrot.slane %v1466_v54, 7 }
 0x143   : > { %v1526_v6 = vstv %s3719_s10  ;;  %v1431_v9 = vperm.slane %v1426_v56, %v2999_v32  ;;  %v1441_v19 = vperm.slane %v1436_v45, %v2999_v32  ;;  %v1451_v59 = vperm.slane %v1446_v4, %v2999_v32  ;;  %vm3769_vm0 = vmand %vm263_vm3, %vm1458_vm15  ;;  %v1620_v0 = vpop.permute.xlu2 %1619  ;;  %v1670_v46 = vpop.permute.xlu0 %1669  ;;  %s3904_s10 = sld [smem:[#allocation9 + $0x7f]] }
 0x144   : > { %v1536_v55 = vstv %s3721_s0  ;;  %v1470_v25 = vsel %vm284_vm2, %v1465_v43, %v1469_v10  ;;  %v1546_v37 = vstv %s3728_s1  ;;  %v1556_v58 = vstv %s3731_s5  ;;  %s3915_s0 = sld [smem:[#allocation9 + $0x80]]  ;;  %vm3966_vm4 = vmand %vm264_vm9, %vm1458_vm15 }
 0x145   : > { %v1518_v51 = vsel %vm1464_vm14, %v1516_v23, %v3706_v47  ;;  %v1423_v15 = vadd.f32 %v1421_v17, %v1371_v16  ;;  %v1472_v22 = vsel %vm3769_vm0, %v1470_v25, 0.0  ;;  %v1517_v39 = vsel %vm1464_vm14, %v3706_v47, %v1516_v23  ;;  %s3920_s1 = sld [smem:[#allocation9 + $0x84]] }
 0x146   : > { %v1521_v8 = vrot.slane %v1518_v51, 7  ;;  %v1475_v53 = vmul.f32 %v1474_v29, %v1472_v22  ;;  %v1485_v41 = vmul.f32 %v1484_v33, %v1472_v22  ;;  %v1495_v34 = vmul.f32 %v1494_v2, %v1472_v22  ;;  %s3928_s5 = sld [smem:[#allocation9 + $0x88]] }
 0x147   : > { %v1505_v36 = vmul.f32 %v1504_v49, %v1472_v22  ;;  %v1433_v1 = vadd.f32 %v1431_v9, %v1381_v61  ;;  %v1443_v27 = vadd.f32 %v1441_v19, %v1391_v14  ;;  %v1570_v63 = vsel %vm1464_vm14, %v1568_v24, %v1566_v35 }
 0x148   : > { %v1522_v44 = vsel %vm284_vm2, %v1517_v39, %v1521_v8  ;;  %v1453_v30 = vadd.f32 %v1451_v59, %v1401_v3  ;;  %v1480_v47 = vperm.slane %v1475_v53, %v2999_v32  ;;  %v1578_v5 = vstv %s3741_s2  ;;  %v1672_v9 = vpop.permute.xlu1 %1671  ;;  %s3937_s2 = sld [smem:[#allocation9 + $0x8c]] }
 0x149   : > { %v1588_v40 = vstv %s3753_s17  ;;  %v1490_v57 = vperm.slane %v1485_v41, %v2999_v32  ;;  %v1500_v60 = vperm.slane %v1495_v34, %v2999_v32  ;;  %v1524_v26 = vsel %vm3769_vm0, %v1522_v44, 0.0  ;;  %s3939_s17 = sld [smem:[#allocation9 + $0x81]] }
 0x14a   : > { %v1573_v18 = vrot.slane %v1570_v63, 7  ;;  %v1510_v48 = vperm.slane %v1505_v36, %v2999_v32  ;;  %v1598_v62 = vstv %s3756_s28  ;;  %v1608_v20 = vstv %s3760_s12  ;;  %s3941_s28 = sld [smem:[#allocation9 + $0x85]] }
 0x14b   : > { %v1569_v7 = vsel %vm1464_vm14, %v1566_v35, %v1568_v24  ;;  %v1527_v23 = vmul.f32 %v1526_v6, %v1524_v26  ;;  %v1537_v12 = vmul.f32 %v1536_v55, %v1524_v26  ;;  %v1547_v28 = vmul.f32 %v1546_v37, %v1524_v26  ;;  %s3943_s12 = sld [smem:[#allocation9 + $0x89]] }
 0x14c   : > { %v1557_v13 = vmul.f32 %v1556_v58, %v1524_v26  ;;  %v1482_v29 = vadd.f32 %v1480_v47, %v1423_v15  ;;  %v1574_v33 = vsel %vm284_vm2, %v1569_v7, %v1573_v18  ;;  %v1630_v2 = vstv %s3774_s24  ;;  %s3946_s24 = sld [smem:[#allocation9 + $0x8d]] }
 0x14d   : > { %v1640_v42 = vstv %s3782_s25  ;;  %v1492_v56 = vadd.f32 %v1490_v57, %v1433_v1  ;;  %v1502_v45 = vadd.f32 %v1500_v60, %v1443_v27  ;;  %v1532_v4 = vperm.slane %v1527_v23, %v2999_v32  ;;  %v1722_v60 = vpop.permute.xlu2 %1721  ;;  %s3951_s25 = sld [smem:[#allocation9 + $0x82]] }
 0x14e   : > { %v1542_v49 = vperm.slane %v1537_v12, %v2999_v32  ;;  %v1552_v43 = vperm.slane %v1547_v28, %v2999_v32  ;;  %v1562_v54 = vperm.slane %v1557_v13, %v2999_v32  ;;  %v1576_v16 = vsel %vm3769_vm0, %v1574_v33, 0.0 }
 0x14f   : > { %v1622_v61 = vsel %vm1464_vm14, %v1620_v0, %v1618_v38  ;;  %v1512_v14 = vadd.f32 %v1510_v48, %v1453_v30  ;;  %v1650_v17 = vstv %s3792_s27  ;;  %v1621_v35 = vsel %vm1464_vm14, %v1618_v38, %v1620_v0  ;;  %v1724_v30 = vpop.permute.xlu0 %1723  ;;  %s3960_s27 = sld [smem:[#allocation9 + $0x86]] }
 0x150   : > { %vm1673_vm1 = vcmp.lt.s32.totalorder %v2903_v11, 112  ;;  %v1579_v24 = vmul.f32 %v1578_v5, %v1576_v16  ;;  %v1589_v3 = vmul.f32 %v1588_v40, %v1576_v16  ;;  %v1599_v10 = vmul.f32 %v1598_v62, %v1576_v16 }
 0x151   : > { %v1609_v6 = vmul.f32 %v1608_v20, %v1576_v16  ;;  %v1534_v19 = vadd.f32 %v1532_v4, %v1482_v29  ;;  %v1660_v59 = vstv %s3797_s29  ;;  %v1625_v55 = vrot.slane %v1622_v61, 7  ;;  %s3980_s29 = sld [smem:[#allocation9 + $0x8a]] }
 0x152   : > { %v1679_v25 = vstv %s3803_s13  ;;  %v1544_v37 = vadd.f32 %v1542_v49, %v1492_v56  ;;  %v1554_v58 = vadd.f32 %v1552_v43, %v1502_v45  ;;  %v1564_v51 = vadd.f32 %v1562_v54, %v1512_v14  ;;  %s3985_s13 = sld [smem:[#allocation9 + $0x8e]] }
 0x153   : > { %v1584_v15 = vperm.slane %v1579_v24, %v2999_v32  ;;  %v1626_v22 = vsel %vm284_vm2, %v1621_v35, %v1625_v55  ;;  %v1689_v39 = vstv %s3810_s21  ;;  %v1700_v8 = vstv %s3812_s3  ;;  %s3990_s21 = sld [smem:[#allocation9 + $0x83]] }
 0x154   : > { %v1675_v53 = vsel %vm1673_vm1, %v1672_v9, %v1670_v46  ;;  %v1594_v41 = vperm.slane %v1589_v3, %v2999_v32  ;;  %v1604_v34 = vperm.slane %v1599_v10, %v2999_v32  ;;  %v1614_v36 = vperm.slane %v1609_v6, %v2999_v32  ;;  %s3997_s3 = sld [smem:[#allocation9 + $0x87]] }
 0x155   : > { %v1711_v38 = vstv %s3817_s15  ;;  %v1628_v1 = vsel %vm3769_vm0, %v1626_v22, 0.0  ;;  %v1674_v27 = vsel %vm1673_vm1, %v1670_v46, %v1672_v9  ;;  %v1677_v44 = vsel %vm268_vm13, %v1675_v53, 0.0  ;;  %s4003_s15 = sld [smem:[#allocation9 + $0x8b]] }
 0x156   : > { %v1730_v63 = vstv %s3821_s16  ;;  %v1586_v47 = vadd.f32 %v1584_v15, %v1534_v19  ;;  %v1631_v5 = vmul.f32 %v1630_v2, %v1628_v1  ;;  %v1641_v40 = vmul.f32 %v1640_v42, %v1628_v1  ;;  %v1773_v42 = vpop.permute.xlu1 %1772  ;;  %s4010_s16 = sld [smem:[#allocation9 + $0x8f]] }
 0x157   : > { %v1651_v57 = vmul.f32 %v1650_v17, %v1628_v1  ;;  %v1661_v26 = vmul.f32 %v1660_v59, %v1628_v1  ;;  %v1681_v50 = vmul.f32 %v1679_v25, %v1677_v44  ;;  %v1691_v18 = vmul.f32 %v1689_v39, %v1677_v44 }
 0x158   : > { %v1702_v48 = vmul.f32 %v1700_v8, %v1677_v44  ;;  %v1596_v62 = vadd.f32 %v1594_v41, %v1544_v37  ;;  %v1606_v20 = vadd.f32 %v1604_v34, %v1554_v58  ;;  %v1636_v7 = vperm.slane %v1631_v5, %v2999_v32  ;;  %v3883_v37 = vpop.permute.xlu0 %1823 }
 0x159   : > { %v1690_v23 = vmul.f32 %v1689_v39, %v1674_v27  ;;  %v1684_v12 = vrot.slane %v1681_v50, 4  ;;  %v1694_v28 = vrot.slane %v1691_v18, 4  ;;  %v1701_v13 = vmul.f32 %v1700_v8, %v1674_v27  ;;  %v1775_v39 = vpop.permute.xlu2 %1774 }
 0x15a   : > { %v1705_v0 = vrot.slane %v1702_v48, 4  ;;  %v1616_v46 = vadd.f32 %v1614_v36, %v1564_v51  ;;  %v1646_v29 = vperm.slane %v1641_v40, %v2999_v32  ;;  %v1656_v33 = vperm.slane %v1651_v57, %v2999_v32 }
 0x15b   : > { %v1680_v2 = vmul.f32 %v1679_v25, %v1674_v27  ;;  %v1666_v56 = vperm.slane %v1661_v26, %v2999_v32  ;;  %v1695_v45 = vsel %vm530_vm7, %v1690_v23, %v1694_v28  ;;  %v1713_v49 = vmul.f32 %v1711_v38, %v1677_v44 }
 0x15c   : > { %v1706_v4 = vsel %vm530_vm7, %v1701_v13, %v1705_v0  ;;  %v1638_v43 = vadd.f32 %v1636_v7, %v1586_v47  ;;  %v1696_v16 = vrot.slane %v1695_v45, 7  ;;  %v1712_v61 = vmul.f32 %v1711_v38, %v1674_v27 }
 0x15d   : > { %v1685_v54 = vsel %vm530_vm7, %v1680_v2, %v1684_v12  ;;  %v1707_v14 = vrot.slane %v1706_v4, 6  ;;  %v1716_v17 = vrot.slane %v1713_v49, 4  ;;  %v1740_v35 = vstv %s3845_s18  ;;  %s2412_s18 = sshll.u32 %s2732_s19, 3  ;;  %s4124_s19 = sshll.u32 %s2810_s23, 3 }
 0x15e   : > { %v1751_v24 = vstv %s3854_s22  ;;  %v1648_v3 = vadd.f32 %v1646_v29, %v1596_v62  ;;  %v1658_v10 = vadd.f32 %v1656_v33, %v1606_v20  ;;  %v1762_v6 = vstv %s3856_s11  ;;  %v1826_v50 = vpop.permute.xlu1 %1825 }
 0x15f   : > { %v1726_v9 = vsel %vm1673_vm1, %v1724_v30, %v1722_v60  ;;  %v1668_v19 = vadd.f32 %v1666_v56, %v1616_v46  ;;  %v1717_v59 = vsel %vm530_vm7, %v1712_v61, %v1716_v17  ;;  %v1725_v55 = vsel %vm1673_vm1, %v1722_v60, %v1724_v30 }
 0x160   : > { %v1728_v25 = vsel %vm268_vm13, %v1726_v9, 0.0  ;;  %v1687_v58 = vadd.f32 %v1685_v54, %v1638_v43  ;;  %v1698_v8 = vadd.f32 %v1696_v16, %v1648_v3  ;;  %v1709_v53 = vadd.f32 %v1707_v14, %v1658_v10  ;;  %v3911_v43 = vpop.permute.xlu0 %1877 }
 0x161   : > { %v1732_v51 = vmul.f32 %v1730_v63, %v1728_v25  ;;  %v1742_v15 = vmul.f32 %v1740_v35, %v1728_v25  ;;  %v1753_v22 = vmul.f32 %v1751_v24, %v1728_v25  ;;  %v1718_v41 = vrot.slane %v1717_v59, 5  ;;  %v3913_v17 = vpop.permute.xlu2 %1875 }
 0x162   : > { %v1764_v34 = vmul.f32 %v1762_v6, %v1728_v25  ;;  %v1741_v38 = vmul.f32 %v1740_v35, %v1725_v55  ;;  %v1731_v44 = vmul.f32 %v1730_v63, %v1725_v55  ;;  %v1752_v30 = vmul.f32 %v1751_v24, %v1725_v55 }
 0x163   : > { %v1735_v36 = vrot.slane %v1732_v51, 4  ;;  %v1745_v1 = vrot.slane %v1742_v15, 4  ;;  %v1756_v27 = vrot.slane %v1753_v22, 4  ;;  %v1781_v5 = vstv %s3864_s14  ;;  %s2130_s14 = scalar_lea.hbm %s4082_s4, %s2412_s18 }
 0x164   : > { %v1767_v47 = vrot.slane %v1764_v34, 4  ;;  %v1791_v57 = vstv %s3867_s26  ;;  %v1776_v60 = vsel %vm1673_vm1, %v1773_v42, %v1775_v39  ;;  %v1777_v26 = vsel %vm1673_vm1, %v1775_v39, %v1773_v42  ;;  %s257_s26 = scalar_lea.vmem [#allocation11], %s4124_s19 }
 0x165   : > { %v1746_v40 = vsel %vm530_vm7, %v1741_v38, %v1745_v1  ;;  %v1720_v18 = vadd.f32 %v1718_v41, %v1668_v19  ;;  %v1736_v63 = vsel %vm530_vm7, %v1731_v44, %v1735_v36  ;;  %v1763_v48 = vmul.f32 %v1762_v6, %v1725_v55 }
 0x166   : > { %v1802_v62 = vstv %s3871_s30  ;;  %v1747_v20 = vrot.slane %v1746_v40, 7  ;;  %v1757_v7 = vsel %vm530_vm7, %v1752_v30, %v1756_v27  ;;  %v1813_v23 = vstv %s3876_s6  ;;  %v1929_v41 = vpop.permute.xlu1 %1928  ;;  %s2132_s30 = sshll.u32 %s257_s26, 4  ;;  %s2134_s6 = sshll.u32 %s2130_s14, 4  ;;  %s2133_s30 = int_to_ptr.vmem [resolvable:$true] %s2132_s30  ;;  %s2135_s6 = int_to_ptr.hbm [resolvable:$true] %s2134_s6 }
 0x167   : > { %v1779_v12 = vsel %vm268_vm13, %v1777_v26, 0.0  ;;  %v1768_v28 = vsel %vm530_vm7, %v1763_v48, %v1767_v47  ;;  %v1792_v0 = vmul.f32 %v1791_v57, %v1776_v60  ;;  %v1738_v29 = vadd.f32 %v1736_v63, %v1687_v58 }
 0x168   : > { %v1783_v13 = vmul.f32 %v1781_v5, %v1779_v12  ;;  %v1793_v46 = vmul.f32 %v1791_v57, %v1779_v12  ;;  %v1782_v33 = vmul.f32 %v1781_v5, %v1776_v60  ;;  %v1803_v2 = vmul.f32 %v1802_v62, %v1776_v60  ;;  %v1981_v48 = vpop.permute.xlu0 %1980 }
 0x169   : > { %v1804_v42 = vmul.f32 %v1802_v62, %v1779_v12  ;;  %v1814_v4 = vmul.f32 %v1813_v23, %v1776_v60  ;;  %v1815_v49 = vmul.f32 %v1813_v23, %v1779_v12  ;;  %v1749_v54 = vadd.f32 %v1747_v20, %v1698_v8  ;;  %v1931_v12 = vpop.permute.xlu2 %1930 }
 0x16a   : > { %v1786_v56 = vrot.slane %v1783_v13, 4  ;;  %v1796_v45 = vrot.slane %v1793_v46, 4  ;;  %v1758_v16 = vrot.slane %v1757_v7, 6  ;;  %v1769_v61 = vrot.slane %v1768_v28, 5 }
 0x16b   : > { %v1807_v14 = vrot.slane %v1804_v42, 4  ;;  %v1818_v24 = vrot.slane %v1815_v49, 4  ;;  %v1832_v3 = vstv %s3887_s7  ;;  %v1842_v10 = vstv %s3892_s8  ;;  %s2119_s7 = scalar_lea.sflag [#allocation4], %s2810_s23  ;;  %s2606_s8 = sshra.s32 %s2135_s6, 4  ;;  %s2607_s8 = int_to_ptr.hbm [resolvable:$true] %s2606_s8 }
 0x16c   : > { %v1797_v35 = vsel %vm530_vm7, %v1792_v0, %v1796_v45  ;;  %v1787_v6 = vsel %vm530_vm7, %v1782_v33, %v1786_v56  ;;  %v1853_v19 = vstv %s3900_s9  ;;  %v1828_v59 = vsel %vm1673_vm1, %v1826_v50, %v3883_v37  ;;  %s2608_s9 = scalar_lea.hbm %s2607_s8, 8  ;;  %p2613_p9 = scmp.lt.s32.totalorder %s2607_s8, %s4082_s4 }
 0x16d   : > { %v1808_v9 = vsel %vm530_vm7, %v1803_v2, %v1807_v14  ;;  %v1819_v55 = vsel %vm530_vm7, %v1814_v4, %v1818_v24  ;;  %v1864_v25 = vstv %s3904_s10  ;;  %v1827_v58 = vsel %vm1673_vm1, %v3883_v37, %v1826_v50  ;;  %p2609_p1 = scmp.ne.s32.totalorder %s2607_s8, %s2608_s9 }
 0x16e   : > { %v1830_v51 = vsel %vm268_vm13, %v1828_v59, 0.0  ;;  %v1760_v15 = vadd.f32 %v1758_v16, %v1709_v53  ;;  %v1771_v22 = vadd.f32 %v1769_v61, %v1720_v18  ;;  %v1798_v39 = vrot.slane %v1797_v35, 7  ;;  %v1983_v14 = vpop.permute.xlu1 %1982 }
 0x16f   : > { %v1834_v8 = vmul.f32 %v1832_v3, %v1830_v51  ;;  %v1789_v34 = vadd.f32 %v1787_v6, %v1738_v29  ;;  %v1809_v36 = vrot.slane %v1808_v9, 6  ;;  %v1844_v38 = vmul.f32 %v1842_v10, %v1830_v51  ;;  %p2610_p4 = pnand %p2609_p1, %p2783_p3 }
 0x170   : > { %v1855_v1 = vmul.f32 %v1853_v19, %v1830_v51  ;;  %v1820_v27 = vrot.slane %v1819_v55, 5  ;;  %v1833_v37 = vmul.f32 %v1832_v3, %v1827_v58  ;;  %v1866_v52 = vmul.f32 %v1864_v25, %v1830_v51 }
 0x171   : > { %v1837_v44 = vrot.slane %v1834_v8, 4  ;;  %v1843_v30 = vmul.f32 %v1842_v10, %v1827_v58  ;;  %v1847_v47 = vrot.slane %v1844_v38, 4  ;;  %v1854_v5 = vmul.f32 %v1853_v19, %v1827_v58  ;;  %v2035_v38 = vpop.permute.xlu0 %2034  ;;  %p2611_p8 = pneg %p2610_p4 }
 0x172   : > { %v1858_v53 = vrot.slane %v1855_v1, 4  ;;  %v1800_v40 = vadd.f32 %v1798_v39, %v1749_v54  ;;  %v1865_v57 = vmul.f32 %v1864_v25, %v1827_v58  ;;  %v1869_v60 = vrot.slane %v1866_v52, 4 }
 0x173   : > { %vm1879_vm3 = vcmp.lt.s32.totalorder %v2903_v11, 111  ;;  %v1811_v26 = vadd.f32 %v1809_v36, %v1760_v15  ;;  %v1838_v50 = vsel %vm530_vm7, %v1833_v37, %v1837_v44  ;;  %v1848_v18 = vsel %vm530_vm7, %v1843_v30, %v1847_v47  ;;  %v2033_v36 = vpop.permute.xlu2 %2032 }
 0x174   : > { %v1859_v63 = vsel %vm530_vm7, %v1854_v5, %v1858_v53  ;;  %v1822_v62 = vadd.f32 %v1820_v27, %v1771_v22  ;;  %v1849_v20 = vrot.slane %v1848_v18, 7  ;;  %v1870_v7 = vsel %vm530_vm7, %v1865_v57, %v1869_v60 }
 0x175   : > { %v1889_v23 = vstv %s3915_s0  ;;  %v1860_v28 = vrot.slane %v1859_v63, 6  ;;  %v1871_v13 = vrot.slane %v1870_v7, 5  ;;  %v1899_v0 = vstv %s3920_s1  ;;  %s2612_s1 = scalar_lea.hbm %s4082_s4, 16 }
 0x176   : > { %v1881_v46 = vsel %vm1879_vm3, %v3911_v43, %v3913_v17  ;;  %v1840_v29 = vadd.f32 %v1838_v50, %v1789_v34  ;;  %v1909_v2 = vstv %s3928_s5  ;;  %v1919_v42 = vstv %s3937_s2  ;;  %p2614_p10 = scmp.lt.s32.totalorder %s2612_s1, %s2608_s9 }
 0x177   : > { %v1884_v56 = vrot.slane %v1881_v46, 7  ;;  %v1880_v45 = vsel %vm1879_vm3, %v3913_v17, %v3911_v43  ;;  %v1941_v4 = vstv %s3939_s17  ;;  %v1951_v49 = vstv %s3941_s28 }
 0x178   : > { %v1933_v31 = vsel %vm1879_vm3, %v1931_v12, %v1929_v41  ;;  %v1851_v21 = vadd.f32 %v1849_v20, %v1800_v40  ;;  %v1932_v16 = vsel %vm1879_vm3, %v1929_v41, %v1931_v12  ;;  %v1862_v43 = vadd.f32 %v1860_v28, %v1811_v26  ;;  %p2615_p2 = por %p2614_p10, %p2613_p9 }
 0x179   : > { %v1885_v54 = vsel %vm284_vm2, %v1880_v45, %v1884_v56  ;;  %v1936_v61 = vrot.slane %v1933_v31, 7  ;;  %v1873_v17 = vadd.f32 %v1871_v13, %v1822_v62  ;;  %v1961_v24 = vstv %s3943_s12 }
 0x17a   : > { %v1887_v35 = vsel %vm3966_vm4, %v1885_v54, 0.0  ;;  %v1971_v19 = vstv %s3946_s24  ;;  %v1993_v55 = vstv %s3951_s25  ;;  %v1985_v25 = vsel %vm1879_vm3, %v1983_v14, %v1981_v48  ;;  %p2616_p11 = pnand %p2615_p2, %p2611_p8 }
 0x17b   : > { %v1890_v3 = vmul.f32 %v1889_v23, %v1887_v35  ;;  %v1900_v10 = vmul.f32 %v1899_v0, %v1887_v35  ;;  %v1910_v6 = vmul.f32 %v1909_v2, %v1887_v35  ;;  %v1920_v9 = vmul.f32 %v1919_v42, %v1887_v35 }
 0x17c   : > { %v1937_v59 = vsel %vm284_vm2, %v1932_v16, %v1936_v61  ;;  %v2003_v8 = vstv %s3960_s27  ;;  %v1984_v41 = vsel %vm1879_vm3, %v1981_v48, %v1983_v14  ;;  %v1988_v34 = vrot.slane %v1985_v25, 7 }
 0x17d   : > { %v1895_v58 = vperm.slane %v1890_v3, %v2999_v32  ;;  %v1905_v51 = vperm.slane %v1900_v10, %v2999_v32  ;;  %v1915_v15 = vperm.slane %v1910_v6, %v2999_v32  ;;  %v1925_v22 = vperm.slane %v1920_v9, %v2999_v32 }
 0x17e   : > { %v1939_v39 = vsel %vm3966_vm4, %v1937_v59, 0.0  ;;  %v2013_v53 = vstv %s3980_s29  ;;  %v2023_v40 = vstv %s3985_s13  ;;  %v1989_v57 = vsel %vm284_vm2, %v1984_v41, %v1988_v34 }
 0x17f   : > { %v1897_v1 = vadd.f32 %v1895_v58, %v1840_v29  ;;  %v1907_v27 = vadd.f32 %v1905_v51, %v1851_v21  ;;  %v1917_v37 = vadd.f32 %v1915_v15, %v1862_v43  ;;  %v1927_v44 = vadd.f32 %v1925_v22, %v1873_v17 }
 0x180   : > { %v1942_v52 = vmul.f32 %v1941_v4, %v1939_v39  ;;  %v1952_v30 = vmul.f32 %v1951_v49, %v1939_v39  ;;  %v1962_v47 = vmul.f32 %v1961_v24, %v1939_v39  ;;  %v1972_v5 = vmul.f32 %v1971_v19, %v1939_v39 }
 0x181   : > { %v2037_v60 = vsel %vm1879_vm3, %v2035_v38, %v2033_v36  ;;  %v1991_v48 = vsel %vm3966_vm4, %v1989_v57, 0.0  ;;  %v2045_v62 = vstv %s3990_s21  ;;  %v2036_v20 = vsel %vm1879_vm3, %v2033_v36, %v2035_v38 }
 0x182   : > { %v1947_v26 = vperm.slane %v1942_v52, %v2999_v32  ;;  %v1957_v50 = vperm.slane %v1952_v30, %v2999_v32  ;;  %v1967_v18 = vperm.slane %v1962_v47, %v2999_v32  ;;  %v1977_v63 = vperm.slane %v1972_v5, %v2999_v32 }
 0x183   : > { %v2040_v7 = vrot.slane %v2037_v60, 7  ;;  %v1994_v0 = vmul.f32 %v1993_v55, %v1991_v48  ;;  %v2004_v46 = vmul.f32 %v2003_v8, %v1991_v48  ;;  %v2014_v29 = vmul.f32 %v2013_v53, %v1991_v48 }
 0x184   : > { %v1949_v23 = vadd.f32 %v1947_v26, %v1897_v1  ;;  %v1959_v12 = vadd.f32 %v1957_v50, %v1907_v27  ;;  %v1969_v28 = vadd.f32 %v1967_v18, %v1917_v37  ;;  %v1979_v13 = vadd.f32 %v1977_v63, %v1927_v44 }
 0x185   : > { %v2024_v2 = vmul.f32 %v2023_v40, %v1991_v48  ;;  %v2055_v42 = vstv %s3997_s3  ;;  %v2065_v56 = vstv %s4003_s15  ;;  %v2075_v45 = vstv %s4010_s16 }
 0x186   : > { %v2041_v4 = vsel %vm284_vm2, %v2036_v20, %v2040_v7  ;;  %v1999_v49 = vperm.slane %v1994_v0, %v2999_v32  ;;  %v2009_v31 = vperm.slane %v2004_v46, %v2999_v32  ;;  %v2019_v11 = vperm.slane %v2014_v29, %v2999_v32 }
 0x187   : > { %v2029_v21 = vperm.slane %v2024_v2, %v2999_v32  ;;  %v2043_v54 = vsel %vm3966_vm4, %v2041_v4, 0.0  ;;  %vm2109_vm6 = vcmask 1042432  }
 0x188   : > { %v2001_v16 = vadd.f32 %v1999_v49, %v1949_v23  ;;  %v2011_v61 = vadd.f32 %v2009_v31, %v1959_v12  ;;  %v2021_v14 = vadd.f32 %v2019_v11, %v1969_v28  ;;  %v2046_v17 = vmul.f32 %v2045_v62, %v2043_v54 }
 0x189   : > { %v2031_v43 = vadd.f32 %v2029_v21, %v1979_v13  ;;  %v2056_v35 = vmul.f32 %v2055_v42, %v2043_v54  ;;  %v2066_v24 = vmul.f32 %v2065_v56, %v2043_v54  ;;  %v2076_v3 = vmul.f32 %v2075_v45, %v2043_v54 }
 0x18a   : > { %v2051_v10 = vperm.slane %v2046_v17, %v2999_v32 }
 0x18b   : > { %v2061_v6 = vperm.slane %v2056_v35, %v2999_v32  ;;  %v2071_v9 = vperm.slane %v2066_v24, %v2999_v32  ;;  %v2081_v19 = vperm.slane %v2076_v3, %v2999_v32 }
 0x18c   : > { %v2053_v59 = vadd.f32 %v2051_v10, %v2001_v16 }
 0x18d   : > { %v2063_v33 = vadd.f32 %v2061_v6, %v2011_v61  ;;  %v2073_v55 = vadd.f32 %v2071_v9, %v2021_v14  ;;  %v2083_v25 = vadd.f32 %v2081_v19, %v2031_v43 }
 0x18e   : > { %v2085_v58 = vperm.slane %v2053_v59, 0  ;;  %v2086_v51 = vperm.slane %v2053_v59, 4 }
 0x18f   : > { %v2090_v15 = vperm.slane %v2063_v33, 1  ;;  %v2091_v22 = vperm.slane %v2063_v33, 5  ;;  %v2096_v39 = vperm.slane %v2073_v55, 6  ;;  %v2095_v8 = vperm.slane %v2073_v55, 2 }
 0x190   : > { %v2100_v41 = vperm.slane %v2083_v25, 3  ;;  %v2101_v32 = vperm.slane %v2083_v25, 7 }
 0x191   : > { %v2104_v34 = vsel %vm284_vm2, %v2085_v58, %v2090_v15  ;;  %v2105_v36 = vsel %vm284_vm2, %v2086_v51, %v2091_v22 }
 0x192   : > { %v2107_v38 = vsel %vm2106_vm5, %v2104_v34, %v2095_v8  ;;  %v2108_v1 = vsel %vm2106_vm5, %v2105_v36, %v2096_v39 }
 0x193   : > { %v2110_v27 = vsel %vm2109_vm6, %v2107_v38, %v2100_v41  ;;  %v2111_v37 = vsel %vm2109_vm6, %v2108_v1, %v2101_v32 }
 0x194   : > { %v2114_v44 = vrot.slane %v2111_v37, 4 }
 0x196   : > { %v2115_v52 = vsel %vm530_vm7, %v2110_v27, %v2114_v44 }
 0x197   : > { %2117 = vst [vmem:[%s257_s26] sm:$0xff] %v2115_v52 }
 0x198   : > { %2619 = shalt.err (!%p2616_p11)
}
 0x199   : > { %2427 = dma.vmem_to_hbm [thread:$0]  (%p2783_p3), %s2133_s30, 128, %s2135_s6, %s2119_s7  }
 0x19a PF: > { %s4125_s23 = sld [smem:[#allocation17_spill]] }
 0x19b   : > { %s4127_s28 = sld [smem:[#allocation20_spill]] }
 0x1a0   : > { %s2146_s12 = sand.u32 1, %s4125_s23  }
 0x1a1   : > { %p4128_p12 = scmp.ge.s32.totalorder %s4127_s28, 2  ;;  %s2147_s24 = scalar_lea.sflag [#allocation4], %s2146_s12 }
 0x1a3   : > { %p2444_p13 = pnand %p4128_p12, %p2746_p6 }
 0x1a5   : > { %p2445_p0 = pneg %p2444_p13 }
 0x1a7   : > { %2653 = dma.done.wait (%p2445_p0), %s2147_s24, 128  }
 0x1a8   : > { %2655 = vsyncadd (%p2445_p0), %s2147_s24, 4294967168  ;;  %s4129_s18 = sld [smem:[#allocation22_spill]] }
 0x1a9   : > { %s4130_s15 = sld [smem:[#allocation18_spill]] }
 0x1aa   : > { %s4131_s16 = sld [smem:[#allocation19_spill]] }
 0x1ab   : > { %s4132_s17 = sld [smem:[#allocation23_spill]] }
 0x1ae   : > { %p20_p5 = scmp.ge.s32.totalorder %s4129_s18, 4  }
 0x1b0   :  { %22 = sbr.rel (!%p20_p5) target bundleno = 13 (0xd), region = 95 }
 0x1b5   :  { %2153 = vsyncpa [#allocation3], 1 }
 0x1b6   :  { %2155 = vsyncpa [#allocation3 + $0x1], 1 }
 0x1b7   :  { %2156 = vsyncpa [#allocation8], 1 }
 0x1b8   :  { %2157 = vsyncpa [#allocation4], 1 }
 0x1b9   :  { %2159 = vsyncpa [#allocation4 + $0x1], 1 }
 0x1ba   :  { %2160 = vsyncpa [#allocation5], 1 }
 0x1bb   :  { %2162 = vsyncpa [#allocation5 + $0x1], 1 }
 0x1bc   :  { %2163 = vsyncpa [#allocation6], 1 }
 0x1bd   :  { %2165 = vsyncpa [#allocation6 + $0x1], 1 }

</bundles_post_ra>
